<compile_context>
chip_gen: v5e
topology: v5e:2x2
jax: 0.10.0
libtpu: 0.0.40
codegen_flags: <defaults>
</compile_context>

<pallas_src>
import functools

import jax
import jax.numpy as jnp
from jax.experimental import pallas as pl
from jax.experimental.pallas import tpu as pltpu

INPUT_DIM = 256
HIDDEN_DIM = 128
NUM_COMPONENTS = 4
OUT_LANES = 128                 # lane-dense fused-head output width (bbox 16 | weights 4 | pad)
_NB = NUM_COMPONENTS * 4        # 16 bbox logits
_NC = NUM_COMPONENTS            # 4 mixture-weight logits

_SQRT1_2 = 0.7071067811865476


def _erf_poly(x):
    # Abramowitz & Stegun 7.1.26, max abs error ~1.5e-7. Uses only VALU + EUP (exp) ops so it
    # is guaranteed to lower in Mosaic regardless of lax.erf support.
    p = 0.3275911
    a1, a2, a3, a4, a5 = 0.254829592, -0.284496736, 1.421413741, -1.453152027, 1.061405429
    sgn = jnp.where(x < 0.0, jnp.float32(-1.0), jnp.float32(1.0))
    ax = jnp.abs(x)
    t = 1.0 / (1.0 + p * ax)
    poly = ((((a5 * t + a4) * t + a3) * t + a2) * t + a1) * t
    return sgn * (1.0 - poly * jnp.exp(-ax * ax))


def _gelu_exact(x):
    # PyTorch nn.GELU default is the exact erf form.
    # TODO(synk): use jax.nn.gelu(x, approximate=False) directly once lax.erf lowering in
    # Mosaic is confirmed for the deployed jax version; this polynomial matches it to ~1e-7.
    return 0.5 * x * (1.0 + _erf_poly(x * _SQRT1_2))


def _prompt_gen_kernel(x_ref, w1_ref, b1_ref, wh_ref, bh_ref, out_ref, pooled_acc,
                       *, hw_total, hw_tile):
    """Grid axis 0 = spatial-reduction chunks of H*W (marked "arbitrary")."""
    k = pl.program_id(0)
    nk = pl.num_programs(0)

    @pl.when(k == 0)
    def _():
        pooled_acc[...] = jnp.zeros_like(pooled_acc)

    if hw_tile % 128 == 0:
        # Streaming path: lane-shaped (B, C, 128) partial-sum accumulator.  Steady state uses
        # only vld + VALU slots (hidden under the HBM stream); one XLU reduce in the epilogue.
        n_slices = hw_tile // 128
        mask_tail = (hw_total % hw_tile) != 0
        if mask_tail:
            lane = jax.lax.broadcasted_iota(jnp.int32, (1, 1, 128), 2)   # hoisted out of loop
            base = k * hw_tile
        for j in range(n_slices):                                        # static unroll
            chunk = x_ref[:, :, j * 128:(j + 1) * 128].astype(jnp.float32)
            if mask_tail:
                chunk = jnp.where(base + j * 128 + lane < hw_total, chunk, 0.0)
            pooled_acc[...] += chunk
    else:
        # Small-map path (hw_tile == hw_total <= 128): single full-extent block, grid == 1.
        pooled_acc[...] += jnp.sum(x_ref[...].astype(jnp.float32), axis=-1, keepdims=True)

    @pl.when(k == nk - 1)
    def _():
        pooled = jnp.sum(pooled_acc[...], axis=-1) * (1.0 / float(hw_total))   # [B, C]

        # Hidden projection + exact GELU.
        h = jnp.dot(pooled, w1_ref[...], preferred_element_type=jnp.float32) + b1_ref[...]
        h = _gelu_exact(h)                                                     # [B, HID]

        # Fused lane-dense head: one 128-wide MXU matmul for bbox + mixture-weight logits.
        logits = jnp.dot(h, wh_ref[...], preferred_element_type=jnp.float32) + bh_ref[...]

        lane = jax.lax.broadcasted_iota(jnp.int32, logits.shape, 1)            # [B, 128]

        # Sigmoid for bbox lanes [0, 16).
        sig = jax.nn.sigmoid(logits)

        # Masked softmax over mixture-weight lanes [16, 20).
        in_soft = (lane >= _NB) & (lane < _NB + _NC)
        masked = jnp.where(in_soft, logits, jnp.float32(-1e30))
        m = jnp.max(masked, axis=-1, keepdims=True)
        e = jnp.where(in_soft, jnp.exp(masked - m), 0.0)
        denom = jnp.sum(e, axis=-1, keepdims=True)
        soft = e * pl.reciprocal(denom, approx=False)

        # Single full-width (lane-dense) store; wrapper slices lanes afterwards.
        out_ref[...] = jnp.where(lane < _NB, sig, soft)


def _vmem_capacity_bytes():
    try:
        cap = getattr(pltpu.get_tpu_info(), "vmem_capacity_bytes", None)
        if cap:
            return int(cap)
    except Exception:
        pass
    return 64 << 20          # conservative fallback (v7x per-TensorCore VMEM)


def _pick_hw_tile(batch, chans, hw, itemsize):
    """Largest spatial tile (multiple of 128, <= array extent) whose double-buffered x block
    fits ~45% of this generation's VMEM; capped at 4096 columns (DMA roofline plateau and
    bound on the static unroll length)."""
    if hw <= 128:
        return hw                                        # single full-extent block
    budget = int(0.45 * _vmem_capacity_bytes())
    bytes_per_col = 2 * batch * chans * itemsize         # double-buffered column of the block
    cap_cols = max(128, (budget // bytes_per_col) // 128 * 128)
    cap_cols = min(cap_cols, 4096)
    largest = (hw // 128) * 128                          # keep the block <= the array extent
    return min(largest, cap_cols)


def fuse_head_params(params):
    """Fuse the two tiny head weights/biases into one lane-dense [HID, 128] / [1, 128] pair.
    Hoisted out of the per-forward path (done once at init)."""
    wh = jnp.zeros((HIDDEN_DIM, OUT_LANES), jnp.float32)
    wh = wh.at[:, :_NB].set(params["w2"]).at[:, _NB:_NB + _NC].set(params["w3"])
    bh = jnp.zeros((1, OUT_LANES), jnp.float32)
    bh = bh.at[:, :_NB].set(params["b2"]).at[:, _NB:_NB + _NC].set(params["b3"])
    return {"w1": params["w1"], "b1": params["b1"], "wh": wh, "bh": bh}


def prompt_generator_forward(x_nchw, fused_params):
    """x_nchw: [B, C, H, W] float32 or bfloat16. Returns (bboxes [B, NC, 4], weights [B, NC])."""
    B, C, H, W = x_nchw.shape
    assert C == INPUT_DIM
    HW = H * W

    # Native layout: contiguous reshape only, no HBM transpose.
    x = x_nchw.reshape(B, C, HW)

    itemsize = jnp.dtype(x.dtype).itemsize
    hw_tile = _pick_hw_tile(B, C, HW, itemsize)
    num_tiles = pl.cdiv(HW, hw_tile)
    acc_shape = (B, C, 128) if hw_tile % 128 == 0 else (B, C, 1)

    block_bytes = B * C * hw_tile * itemsize
    acc_bytes = B * C * acc_shape[-1] * 4
    vmem_cap = _vmem_capacity_bytes()
    vmem_limit = min(2 * block_bytes + acc_bytes + (6 << 20), int(0.85 * vmem_cap))
    vmem_limit = max(vmem_limit, min(16 << 20, int(0.85 * vmem_cap)))

    cost = pl.CostEstimate(
        flops=2 * B * (C * HW + C * HIDDEN_DIM + HIDDEN_DIM * OUT_LANES),
        transcendentals=B * (HIDDEN_DIM + 2 * OUT_LANES),
        bytes_accessed=itemsize * B * C * HW
        + 4 * (INPUT_DIM * HIDDEN_DIM + HIDDEN_DIM * OUT_LANES
               + HIDDEN_DIM + OUT_LANES + B * OUT_LANES),
    )

    kernel = functools.partial(_prompt_gen_kernel, hw_total=HW, hw_tile=hw_tile)

    grid_spec = pltpu.PrefetchScalarGridSpec(
        num_scalar_prefetch=0,
        grid=(num_tiles,),
        in_specs=[
            pl.BlockSpec((B, C, hw_tile), lambda k: (0, 0, k)),            # streamed x
            pl.BlockSpec((INPUT_DIM, HIDDEN_DIM), lambda k: (0, 0)),       # w1
            pl.BlockSpec((1, HIDDEN_DIM), lambda k: (0, 0)),               # b1
            pl.BlockSpec((HIDDEN_DIM, OUT_LANES), lambda k: (0, 0)),       # fused head weight
            pl.BlockSpec((1, OUT_LANES), lambda k: (0, 0)),                # fused head bias
        ],
        out_specs=pl.BlockSpec((B, OUT_LANES), lambda k: (0, 0)),
        scratch_shapes=[pltpu.VMEM(acc_shape, jnp.float32)],               # pooled-sum acc
    )

    fused = pl.pallas_call(
        kernel,
        out_shape=jax.ShapeDtypeStruct((B, OUT_LANES), jnp.float32),
        grid_spec=grid_spec,
        compiler_params=pltpu.CompilerParams(
            dimension_semantics=("arbitrary",),        # spatial-reduction axis
            vmem_limit_bytes=int(vmem_limit),
        ),
        cost_estimate=cost,
    )(x, fused_params["w1"], fused_params["b1"], fused_params["wh"], fused_params["bh"])

    bboxes = fused[:, :_NB].reshape(B, NUM_COMPONENTS, 4)
    wts = fused[:, _NB:_NB + _NC]
    return bboxes, wts


def init_params(key):
    k1, k2, k3 = jax.random.split(key, 3)
    scale1 = 1.0 / jnp.sqrt(INPUT_DIM)
    scale2 = 1.0 / jnp.sqrt(HIDDEN_DIM)
    return {
        "w1": jax.random.normal(k1, (INPUT_DIM, HIDDEN_DIM), jnp.float32) * scale1,
        "b1": jnp.zeros((1, HIDDEN_DIM), jnp.float32),
        "w2": jax.random.normal(k2, (HIDDEN_DIM, NUM_COMPONENTS * 4), jnp.float32) * scale2,
        "b2": jnp.zeros((1, NUM_COMPONENTS * 4), jnp.float32),
        "w3": jax.random.normal(k3, (HIDDEN_DIM, NUM_COMPONENTS), jnp.float32) * scale2,
        "b3": jnp.zeros((1, NUM_COMPONENTS), jnp.float32),
    }


def _reference(x_nchw, params):
    B, C, H, W = x_nchw.shape
    pooled = jnp.mean(x_nchw.astype(jnp.float32).reshape(B, C, H * W), axis=-1)
    h = jax.nn.gelu(pooled @ params["w1"] + params["b1"], approximate=False)   # exact erf GELU
    bbox = jax.nn.sigmoid(h @ params["w2"] + params["b2"]).reshape(B, NUM_COMPONENTS, 4)
    wts = jax.nn.softmax(h @ params["w3"] + params["b3"], axis=-1)
    return bbox, wts


if __name__ == "__main__":
    key = jax.random.PRNGKey(0)
    k_x, k_x2, k_p = jax.random.split(key, 3)

    params = init_params(k_p)
    fused_params = fuse_head_params(params)        # fused once, outside the forward path
    fwd = jax.jit(prompt_generator_forward)

    # Small shape consistent with the module: batch=2, 256 channels, 8x8 spatial.
    B, H, W = 2, 8, 8
    x = jax.random.normal(k_x, (B, INPUT_DIM, H, W), dtype=jnp.float32)
    bboxes, wts = fwd(x, fused_params)
    jax.block_until_ready((bboxes, wts))

    ref_b, ref_w = _reference(x, params)
    assert bboxes.shape == (B, NUM_COMPONENTS, 4)
    assert wts.shape == (B, NUM_COMPONENTS)
    assert jnp.allclose(bboxes, ref_b, atol=1e-5, rtol=1e-5)
    assert jnp.allclose(wts, ref_w, atol=1e-5, rtol=1e-5)

    # Non-multiple-of-128 spatial map: exercises the tiled + masked streaming path.
    H2, W2 = 20, 20
    x2 = jax.random.normal(k_x2, (B, INPUT_DIM, H2, W2), dtype=jnp.float32)
    bboxes2, wts2 = fwd(x2, fused_params)
    jax.block_until_ready((bboxes2, wts2))

    ref_b2, ref_w2 = _reference(x2, params)
    assert jnp.allclose(bboxes2, ref_b2, atol=1e-5, rtol=1e-5)
    assert jnp.allclose(wts2, ref_w2, atol=1e-5, rtol=1e-5)

    print("KERNEL_OK")
</pallas_src>

<mosaic_0001>
module attributes {stable_mosaic.version = 11 : i64} {
  func.func @_prompt_gen_kernel(%arg0: i32, %arg1: memref<2x256x64xf32, #tpu.memory_space<vmem>>, %arg2: memref<256x128xf32, #tpu.memory_space<vmem>>, %arg3: memref<1x128xf32, #tpu.memory_space<vmem>>, %arg4: memref<128x128xf32, #tpu.memory_space<vmem>>, %arg5: memref<1x128xf32, #tpu.memory_space<vmem>>, %arg6: memref<2x128xf32, #tpu.memory_space<vmem>>, %arg7: memref<2x256x1xf32, #tpu.memory_space<vmem>>) attributes {dimension_semantics = [#tpu.dimension_semantics<arbitrary>], iteration_bounds = array<i64: 1>, scalar_prefetch = 0 : i64, scratch_operands = 1 : i64, tpu.core_type = #tpu.core_type<tc>, window_params = [{transform_indices = @transform_0, window_bounds = array<i64: 2, 256, 64>}, {pipeline_mode = #tpu.pipeline_mode<synchronous>, transform_indices = @transform_1, window_bounds = array<i64: 256, 128>}, {pipeline_mode = #tpu.pipeline_mode<synchronous>, transform_indices = @transform_2, window_bounds = array<i64: 1, 128>}, {pipeline_mode = #tpu.pipeline_mode<synchronous>, transform_indices = @transform_3, window_bounds = array<i64: 128, 128>}, {pipeline_mode = #tpu.pipeline_mode<synchronous>, transform_indices = @transform_4, window_bounds = array<i64: 1, 128>}, {pipeline_mode = #tpu.pipeline_mode<synchronous>, transform_indices = @transform_5, window_bounds = array<i64: 2, 128>}]} {
    %c0_i32 = arith.constant 0 : i32
    %0 = arith.cmpi eq, %arg0, %c0_i32 : i32
    %1 = arith.extui %0 : i1 to i32
    %c0_i32_0 = arith.constant 0 : i32
    %2 = arith.cmpi ne, %1, %c0_i32_0 : i32
    scf.if %2 {
      %cst_11 = arith.constant 0.000000e+00 : f32
      %12 = vector.broadcast %cst_11 : f32 to vector<2x256x1xf32>
      %c0_12 = arith.constant 0 : index
      %c0_13 = arith.constant 0 : index
      %c0_14 = arith.constant 0 : index
      %13 = vector.load %arg7[%c0_12, %c0_13, %c0_14] : memref<2x256x1xf32, #tpu.memory_space<vmem>>, vector<2x256x1xf32>
      tpu.vector_store %arg7[%c0_12, %c0_13, %c0_14], %12 {strides = array<i32>} : memref<2x256x1xf32, #tpu.memory_space<vmem>>, vector<2x256x1xf32>,
    } else {
    }
    %c0 = arith.constant 0 : index
    %c0_1 = arith.constant 0 : index
    %c0_2 = arith.constant 0 : index
    %3 = vector.load %arg7[%c0, %c0_1, %c0_2] : memref<2x256x1xf32, #tpu.memory_space<vmem>>, vector<2x256x1xf32>
    %c0_3 = arith.constant 0 : index
    %c0_4 = arith.constant 0 : index
    %c0_5 = arith.constant 0 : index
    %4 = vector.load %arg1[%c0_3, %c0_4, %c0_5] : memref<2x256x64xf32, #tpu.memory_space<vmem>>, vector<2x256x64xf32>
    %cst = arith.constant dense<0.000000e+00> : vector<2x256xf32>
    %5 = vector.multi_reduction <add>, %4, %cst [2] : vector<2x256x64xf32> to vector<2x256xf32>
    %6 = vector.shape_cast %5 : vector<2x256xf32> to vector<2x256x1xf32>
    %7 = arith.addf %3, %6 : vector<2x256x1xf32>
    %c0_6 = arith.constant 0 : index
    %c0_7 = arith.constant 0 : index
    %c0_8 = arith.constant 0 : index
    %8 = vector.load %arg7[%c0_6, %c0_7, %c0_8] : memref<2x256x1xf32, #tpu.memory_space<vmem>>, vector<2x256x1xf32>
    tpu.vector_store %arg7[%c0_6, %c0_7, %c0_8], %7 {strides = array<i32>} : memref<2x256x1xf32, #tpu.memory_space<vmem>>, vector<2x256x1xf32>,
    %c0_i32_9 = arith.constant 0 : i32
    %9 = arith.cmpi eq, %arg0, %c0_i32_9 : i32
    %10 = arith.extui %9 : i1 to i32
    %c0_i32_10 = arith.constant 0 : i32
    %11 = arith.cmpi ne, %10, %c0_i32_10 : i32
    scf.if %11 {
      %c0_11 = arith.constant 0 : index
      %c0_12 = arith.constant 0 : index
      %c0_13 = arith.constant 0 : index
      %12 = vector.load %arg7[%c0_11, %c0_12, %c0_13] : memref<2x256x1xf32, #tpu.memory_space<vmem>>, vector<2x256x1xf32>
      %cst_14 = arith.constant dense<0.000000e+00> : vector<2x256xf32>
      %13 = vector.multi_reduction <add>, %12, %cst_14 [2] : vector<2x256x1xf32> to vector<2x256xf32>
      %cst_15 = arith.constant 1.562500e-02 : f32
      %14 = vector.broadcast %cst_15 : f32 to vector<2x256xf32>
      %15 = arith.mulf %13, %14 : vector<2x256xf32>
      %c0_16 = arith.constant 0 : index
      %c0_17 = arith.constant 0 : index
      %16 = vector.load %arg2[%c0_16, %c0_17] : memref<256x128xf32, #tpu.memory_space<vmem>>, vector<256x128xf32>
      %cst_18 = arith.constant dense<0.000000e+00> : vector<2x128xf32>
      %17 = tpu.matmul %15, %16, %cst_18 {dimension_numbers = #tpu.dot_dimension_numbers<[1], [0], [0], [1], [0, 0, 1, 1], [], []>} : vector<2x256xf32>, vector<256x128xf32>, vector<2x128xf32> -> vector<2x128xf32>
      %c0_19 = arith.constant 0 : index
      %c0_20 = arith.constant 0 : index
      %18 = vector.load %arg3[%c0_19, %c0_20] : memref<1x128xf32, #tpu.memory_space<vmem>>, vector<1x128xf32>
      %19 = vector.broadcast %18 : vector<1x128xf32> to vector<2x128xf32>
      %20 = arith.addf %17, %19 : vector<2x128xf32>
      %cst_21 = arith.constant 5.000000e-01 : f32
      %21 = vector.broadcast %cst_21 : f32 to vector<2x128xf32>
      %22 = arith.mulf %21, %20 : vector<2x128xf32>
      %cst_22 = arith.constant 0.707106769 : f32
      %23 = vector.broadcast %cst_22 : f32 to vector<2x128xf32>
      %24 = arith.mulf %20, %23 : vector<2x128xf32>
      %cst_23 = arith.constant 0.000000e+00 : f32
      %25 = vector.broadcast %cst_23 : f32 to vector<2x128xf32>
      %26 = arith.cmpf olt, %24, %25 : vector<2x128xf32>
      %cst_24 = arith.constant -1.000000e+00 : f32
      %cst_25 = arith.constant 1.000000e+00 : f32
      %27 = vector.broadcast %cst_24 : f32 to vector<2x128xf32>
      %28 = vector.broadcast %cst_25 : f32 to vector<2x128xf32>
      %29 = arith.select %26, %27, %28 : vector<2x128xi1>, vector<2x128xf32>
      %30 = math.absf %24 : vector<2x128xf32>
      %cst_26 = arith.constant 0.327591091 : f32
      %31 = vector.broadcast %cst_26 : f32 to vector<2x128xf32>
      %32 = arith.mulf %31, %30 : vector<2x128xf32>
      %cst_27 = arith.constant 1.000000e+00 : f32
      %33 = vector.broadcast %cst_27 : f32 to vector<2x128xf32>
      %34 = arith.addf %33, %32 : vector<2x128xf32>
      %cst_28 = arith.constant 1.000000e+00 : f32
      %35 = vector.broadcast %cst_28 : f32 to vector<2x128xf32>
      %36 = arith.divf %35, %34 : vector<2x128xf32>
      %cst_29 = arith.constant 1.06140542 : f32
      %37 = vector.broadcast %cst_29 : f32 to vector<2x128xf32>
      %38 = arith.mulf %37, %36 : vector<2x128xf32>
      %cst_30 = arith.constant -1.45315206 : f32
      %39 = vector.broadcast %cst_30 : f32 to vector<2x128xf32>
      %40 = arith.addf %38, %39 : vector<2x128xf32>
      %41 = arith.mulf %40, %36 : vector<2x128xf32>
      %cst_31 = arith.constant 1.42141378 : f32
      %42 = vector.broadcast %cst_31 : f32 to vector<2x128xf32>
      %43 = arith.addf %41, %42 : vector<2x128xf32>
      %44 = arith.mulf %43, %36 : vector<2x128xf32>
      %cst_32 = arith.constant -0.284496725 : f32
      %45 = vector.broadcast %cst_32 : f32 to vector<2x128xf32>
      %46 = arith.addf %44, %45 : vector<2x128xf32>
      %47 = arith.mulf %46, %36 : vector<2x128xf32>
      %cst_33 = arith.constant 0.254829586 : f32
      %48 = vector.broadcast %cst_33 : f32 to vector<2x128xf32>
      %49 = arith.addf %47, %48 : vector<2x128xf32>
      %50 = arith.mulf %49, %36 : vector<2x128xf32>
      %cst_34 = arith.constant 0.000000e+00 : f32
      %51 = vector.broadcast %cst_34 : f32 to vector<2x128xf32>
      %52 = arith.subf %51, %30 : vector<2x128xf32>
      %53 = arith.mulf %52, %30 : vector<2x128xf32>
      %54 = math.exp %53 : vector<2x128xf32>
      %55 = arith.mulf %50, %54 : vector<2x128xf32>
      %cst_35 = arith.constant 1.000000e+00 : f32
      %56 = vector.broadcast %cst_35 : f32 to vector<2x128xf32>
      %57 = arith.subf %56, %55 : vector<2x128xf32>
      %58 = arith.mulf %29, %57 : vector<2x128xf32>
      %cst_36 = arith.constant 1.000000e+00 : f32
      %59 = vector.broadcast %cst_36 : f32 to vector<2x128xf32>
      %60 = arith.addf %59, %58 : vector<2x128xf32>
      %61 = arith.mulf %22, %60 : vector<2x128xf32>
      %c0_37 = arith.constant 0 : index
      %c0_38 = arith.constant 0 : index
      %62 = vector.load %arg4[%c0_37, %c0_38] : memref<128x128xf32, #tpu.memory_space<vmem>>, vector<128x128xf32>
      %cst_39 = arith.constant dense<0.000000e+00> : vector<2x128xf32>
      %63 = tpu.matmul %61, %62, %cst_39 {dimension_numbers = #tpu.dot_dimension_numbers<[1], [0], [0], [1], [0, 0, 1, 1], [], []>} : vector<2x128xf32>, vector<128x128xf32>, vector<2x128xf32> -> vector<2x128xf32>
      %c0_40 = arith.constant 0 : index
      %c0_41 = arith.constant 0 : index
      %64 = vector.load %arg5[%c0_40, %c0_41] : memref<1x128xf32, #tpu.memory_space<vmem>>, vector<1x128xf32>
      %65 = vector.broadcast %64 : vector<1x128xf32> to vector<2x128xf32>
      %66 = arith.addf %63, %65 : vector<2x128xf32>
      %67 = tpu.iota {dimensions = array<i32: 1>} : vector<2x128xi32>
      %68 = arith.negf %66 : vector<2x128xf32>
      %69 = math.exp %68 : vector<2x128xf32>
      %cst_42 = arith.constant 1.000000e+00 : f32
      %70 = vector.broadcast %cst_42 : f32 to vector<2x128xf32>
      %71 = arith.addf %70, %69 : vector<2x128xf32>
      %72 = arith.divf %70, %71 : vector<2x128xf32>
      %c16_i32 = arith.constant 16 : i32
      %73 = vector.broadcast %c16_i32 : i32 to vector<2x128xi32>
      %74 = arith.cmpi sge, %67, %73 : vector<2x128xi32>
      %c20_i32 = arith.constant 20 : i32
      %75 = vector.broadcast %c20_i32 : i32 to vector<2x128xi32>
      %76 = arith.cmpi slt, %67, %75 : vector<2x128xi32>
      %77 = arith.andi %74, %76 : vector<2x128xi1>
      %cst_43 = arith.constant -1.000000e+30 : f32
      %78 = vector.broadcast %cst_43 : f32 to vector<2x128xf32>
      %79 = arith.select %77, %66, %78 : vector<2x128xi1>, vector<2x128xf32>
      %cst_44 = arith.constant dense<0xFF800000> : vector<2xf32>
      %80 = vector.multi_reduction <maximumf>, %79, %cst_44 [1] : vector<2x128xf32> to vector<2xf32>
      %81 = vector.shape_cast %80 : vector<2xf32> to vector<2x1xf32>
      %82 = vector.broadcast %81 : vector<2x1xf32> to vector<2x128xf32>
      %83 = arith.subf %79, %82 : vector<2x128xf32>
      %84 = math.exp %83 : vector<2x128xf32>
      %cst_45 = arith.constant 0.000000e+00 : f32
      %85 = vector.broadcast %cst_45 : f32 to vector<2x128xf32>
      %86 = arith.select %77, %84, %85 : vector<2x128xi1>, vector<2x128xf32>
      %cst_46 = arith.constant dense<0.000000e+00> : vector<2xf32>
      %87 = vector.multi_reduction <add>, %86, %cst_46 [1] : vector<2x128xf32> to vector<2xf32>
      %88 = vector.shape_cast %87 : vector<2xf32> to vector<2x1xf32>
      %89 = tpu.reciprocal %88 : vector<2x1xf32> -> vector<2x1xf32>
      %90 = vector.broadcast %89 : vector<2x1xf32> to vector<2x128xf32>
      %91 = arith.mulf %86, %90 : vector<2x128xf32>
      %c16_i32_47 = arith.constant 16 : i32
      %92 = vector.broadcast %c16_i32_47 : i32 to vector<2x128xi32>
      %93 = arith.cmpi slt, %67, %92 : vector<2x128xi32>
      %94 = arith.select %93, %72, %91 : vector<2x128xi1>, vector<2x128xf32>
      %c0_48 = arith.constant 0 : index
      %c0_49 = arith.constant 0 : index
      %95 = vector.load %arg6[%c0_48, %c0_49] : memref<2x128xf32, #tpu.memory_space<vmem>>, vector<2x128xf32>
      tpu.vector_store %arg6[%c0_48, %c0_49], %94 {strides = array<i32>} : memref<2x128xf32, #tpu.memory_space<vmem>>, vector<2x128xf32>,
    } else {
    }
    return
  }
  func.func @transform_0(%arg0: i32) -> (i32, i32, i32) {
    %c0_i32 = arith.constant 0 : i32
    %c0_i32_0 = arith.constant 0 : i32
    %c0_i32_1 = arith.constant 0 : i32
    return %c0_i32, %c0_i32_0, %arg0 : i32, i32, i32
  }
  func.func @transform_1(%arg0: i32) -> (i32, i32) {
    %c0_i32 = arith.constant 0 : i32
    %c0_i32_0 = arith.constant 0 : i32
    %c0_i32_1 = arith.constant 0 : i32
    return %c0_i32, %c0_i32_0 : i32, i32
  }
  func.func @transform_2(%arg0: i32) -> (i32, i32) {
    %c0_i32 = arith.constant 0 : i32
    %c0_i32_0 = arith.constant 0 : i32
    %c0_i32_1 = arith.constant 0 : i32
    return %c0_i32, %c0_i32_0 : i32, i32
  }
  func.func @transform_3(%arg0: i32) -> (i32, i32) {
    %c0_i32 = arith.constant 0 : i32
    %c0_i32_0 = arith.constant 0 : i32
    %c0_i32_1 = arith.constant 0 : i32
    return %c0_i32, %c0_i32_0 : i32, i32
  }
  func.func @transform_4(%arg0: i32) -> (i32, i32) {
    %c0_i32 = arith.constant 0 : i32
    %c0_i32_0 = arith.constant 0 : i32
    %c0_i32_1 = arith.constant 0 : i32
    return %c0_i32, %c0_i32_0 : i32, i32
  }
  func.func @transform_5(%arg0: i32) -> (i32, i32) {
    %c0_i32 = arith.constant 0 : i32
    %c0_i32_0 = arith.constant 0 : i32
    %c0_i32_1 = arith.constant 0 : i32
    return %c0_i32, %c0_i32_0 : i32, i32
  }
}

</mosaic_0001>

<bundles_post_ra>
// kernel: prompt_generator_forward.1
= control target key start
LH: loop header
LB: loop body
LE: loop exit
PB: predicated region body
PF: predicated region fallthrough
CT: control target
= control target key end

     0   :  { %vm217_vm0 = vcmask 523264   ;;  %vm24_vm1 = vcmask 7168   ;;  %vm1031_vm2 = vcmask 130112   ;;  %vm1035_vm3 = vcmask 195712   ;;  %s2466_s0 = inlined_call_operand.vmem [shape: f32[2,256,64], index: 0, kind: input, shape index: {}]   ;;  %s2467_s2 = inlined_call_operand.vmem [shape: f32[1,128], index: 2, kind: input, shape index: {}]   ;;  %s2468_s1 = inlined_call_operand.vmem [shape: f32[256,128], index: 1, kind: input, shape index: {}]   ;;  %s2469_s4 = inlined_call_operand.vmem [shape: f32[1,128], index: 4, kind: input, shape index: {}]   ;;  %s2470_s3 = inlined_call_operand.vmem [shape: f32[128,128], index: 3, kind: input, shape index: {}]   ;;  %s2471_s5 = inlined_call_operand.vmem [shape: f32[2,128], index: 5, kind: output, shape index: {}]  }
   0x1   :  { %v157_v0 = vld [vmem:[%s2466_s0 + $0x20] sm:$0xff]  ;;  %v155_v1 = vld [vmem:[%s2466_s0 + $0x10] sm:$0xff]  ;;  %v158_v6 = vld [vmem:[%s2466_s0 + $0x28] sm:$0xff]  ;;  %vm1039_vm4 = vcmask 261312   ;;  %vm1043_vm5 = vcmask 326912   ;;  %vm1047_vm6 = vcmask 392512  }
   0x2   :  { %v153_v2 = vld [vmem:[%s2466_s0] sm:$0xff]  ;;  %v230_v3 = vsel %vm217_vm0, %v157_v0, 0.0  ;;  %v224_v4 = vsel %vm217_vm0, %v155_v1, 0.0  ;;  %v156_v7 = vld [vmem:[%s2466_s0 + $0x18] sm:$0xff]  ;;  %v154_v8 = vld [vmem:[%s2466_s0 + $0x8] sm:$0xff]  ;;  %v233_v9 = vsel %vm217_vm0, %v158_v6, 0.0 }
   0x3   :  { %v218_v5 = vsel %vm217_vm0, %v153_v2, 0.0  ;;  %231 = vadd.xlane.f32.xlu2 %v230_v3  ;;  %225 = vadd.xlane.f32.xlu1 %v224_v4  ;;  %v227_v10 = vsel %vm217_vm0, %v156_v7, 0.0  ;;  %v221_v11 = vsel %vm217_vm0, %v154_v8, 0.0  ;;  %v161_v12 = vld [vmem:[%s2466_s0 + $0x40] sm:$0xff]  ;;  %v160_v13 = vld [vmem:[%s2466_s0 + $0x38] sm:$0xff]  ;;  %v159_v14 = vld [vmem:[%s2466_s0 + $0x30] sm:$0xff] }
   0x4   :  { %219 = vadd.xlane.f32.xlu0 %v218_v5  ;;  %v242_v15 = vsel %vm217_vm0, %v161_v12, 0.0  ;;  %v239_v16 = vsel %vm217_vm0, %v160_v13, 0.0  ;;  %v236_v17 = vsel %vm217_vm0, %v159_v14, 0.0  ;;  %v164_v18 = vld [vmem:[%s2466_s0 + $0x58] sm:$0xff]  ;;  %v163_v19 = vld [vmem:[%s2466_s0 + $0x50] sm:$0xff]  ;;  %v162_v20 = vld [vmem:[%s2466_s0 + $0x48] sm:$0xff] }
   0x5   :  { %v251_v21 = vsel %vm217_vm0, %v164_v18, 0.0  ;;  %v248_v22 = vsel %vm217_vm0, %v163_v19, 0.0  ;;  %v245_v23 = vsel %vm217_vm0, %v162_v20, 0.0  ;;  %v167_v24 = vld [vmem:[%s2466_s0 + $0x70] sm:$0xff]  ;;  %v166_v25 = vld [vmem:[%s2466_s0 + $0x68] sm:$0xff]  ;;  %v165_v26 = vld [vmem:[%s2466_s0 + $0x60] sm:$0xff] }
   0x6   :  { %v260_v27 = vsel %vm217_vm0, %v167_v24, 0.0  ;;  %v257_v28 = vsel %vm217_vm0, %v166_v25, 0.0  ;;  %v254_v29 = vsel %vm217_vm0, %v165_v26, 0.0  ;;  %v170_v30 = vld [vmem:[%s2466_s0 + $0x88] sm:$0xff]  ;;  %v169_v31 = vld [vmem:[%s2466_s0 + $0x80] sm:$0xff]  ;;  %v168_v32 = vld [vmem:[%s2466_s0 + $0x78] sm:$0xff] }
   0x7   :  { %v269_v33 = vsel %vm217_vm0, %v170_v30, 0.0  ;;  %v266_v34 = vsel %vm217_vm0, %v169_v31, 0.0  ;;  %v263_v35 = vsel %vm217_vm0, %v168_v32, 0.0  ;;  %v185_v36 = vld [vmem:[%s2466_s0 + $0x100] sm:$0xff]  ;;  %v172_v37 = vld [vmem:[%s2466_s0 + $0x98] sm:$0xff]  ;;  %v171_v38 = vld [vmem:[%s2466_s0 + $0x90] sm:$0xff] }
   0x8   :  { %v314_v39 = vsel %vm217_vm0, %v185_v36, 0.0  ;;  %v275_v40 = vsel %vm217_vm0, %v172_v37, 0.0  ;;  %v272_v41 = vsel %vm217_vm0, %v171_v38, 0.0  ;;  %v188_v42 = vld [vmem:[%s2466_s0 + $0x118] sm:$0xff]  ;;  %v187_v43 = vld [vmem:[%s2466_s0 + $0x110] sm:$0xff]  ;;  %v186_v44 = vld [vmem:[%s2466_s0 + $0x108] sm:$0xff] }
   0x9   :  { %v323_v45 = vsel %vm217_vm0, %v188_v42, 0.0  ;;  %v320_v46 = vsel %vm217_vm0, %v187_v43, 0.0  ;;  %v317_v47 = vsel %vm217_vm0, %v186_v44, 0.0  ;;  %v189_v48 = vld [vmem:[%s2466_s0 + $0x120] sm:$0xff]  ;;  %v202_v49 = vld [vmem:[%s2466_s0 + $0x188] sm:$0xff]  ;;  %v204_v54 = vld [vmem:[%s2466_s0 + $0x198] sm:$0xff] }
   0xa   :  { %v201_v50 = vld [vmem:[%s2466_s0 + $0x180] sm:$0xff]  ;;  %v326_v51 = vsel %vm217_vm0, %v189_v48, 0.0  ;;  %v365_v52 = vsel %vm217_vm0, %v202_v49, 0.0  ;;  %v190_v55 = vld [vmem:[%s2466_s0 + $0x128] sm:$0xff]  ;;  %v203_v56 = vld [vmem:[%s2466_s0 + $0x190] sm:$0xff]  ;;  %v371_v57 = vsel %vm217_vm0, %v204_v54, 0.0 }
   0xb   :  { %234 = vadd.xlane.f32.xlu2 %v233_v9  ;;  %228 = vadd.xlane.f32.xlu1 %v227_v10  ;;  %v362_v53 = vsel %vm217_vm0, %v201_v50, 0.0  ;;  %v329_v58 = vsel %vm217_vm0, %v190_v55, 0.0  ;;  %v368_v59 = vsel %vm217_vm0, %v203_v56, 0.0  ;;  %v205_v60 = vld [vmem:[%s2466_s0 + $0x1a0] sm:$0xff]  ;;  %v191_v61 = vld [vmem:[%s2466_s0 + $0x130] sm:$0xff]  ;;  %v1544_v1 = vmov 0.0  }
   0xc   :  { %222 = vadd.xlane.f32.xlu0 %v221_v11  ;;  %v173_v62 = vld [vmem:[%s2466_s0 + $0xa0] sm:$0xff]  ;;  %v374_v63 = vsel %vm217_vm0, %v205_v60, 0.0  ;;  %v332_v0 = vsel %vm217_vm0, %v191_v61, 0.0  ;;  %29 = vst.msk [vmem:[#allocation2 + $0x20] sm:$0xff] %vm24_vm1, %v1544_v1  ;;  %v206_v3 = vld [vmem:[%s2466_s0 + $0x1a8] sm:$0xff]  ;;  %v192_v4 = vld [vmem:[%s2466_s0 + $0x138] sm:$0xff] }
   0xd   :  { %v278_v2 = vsel %vm217_vm0, %v173_v62, 0.0  ;;  %25 = vst.msk [vmem:[#allocation2] sm:$0xff] %vm24_vm1, %v1544_v1  ;;  %v174_v5 = vld [vmem:[%s2466_s0 + $0xa8] sm:$0xff]  ;;  %v377_v6 = vsel %vm217_vm0, %v206_v3, 0.0  ;;  %v335_v7 = vsel %vm217_vm0, %v192_v4, 0.0  ;;  %v207_v9 = vld [vmem:[%s2466_s0 + $0x1b0] sm:$0xff] }
   0xe   :  { %26 = vst.msk [vmem:[#allocation2 + $0x8] sm:$0xff] %vm24_vm1, %v1544_v1  ;;  %v281_v8 = vsel %vm217_vm0, %v174_v5, 0.0  ;;  %v193_v10 = vld [vmem:[%s2466_s0 + $0x140] sm:$0xff]  ;;  %v175_v11 = vld [vmem:[%s2466_s0 + $0xb0] sm:$0xff]  ;;  %v380_v12 = vsel %vm217_vm0, %v207_v9, 0.0  ;;  %v178_v32 = vld [vmem:[%s2466_s0 + $0xc8] sm:$0xff] }
   0xf   :  { %27 = vst.msk [vmem:[#allocation2 + $0x10] sm:$0xff] %vm24_vm1, %v1544_v1  ;;  %v338_v13 = vsel %vm217_vm0, %v193_v10, 0.0  ;;  %v284_v14 = vsel %vm217_vm0, %v175_v11, 0.0  ;;  %v293_v37 = vsel %vm217_vm0, %v178_v32, 0.0  ;;  %v211_v38 = vld [vmem:[%s2466_s0 + $0x1d0] sm:$0xff]  ;;  %v198_v48 = vld [vmem:[%s2466_s0 + $0x168] sm:$0xff] }
  0x10   :  { %28 = vst.msk [vmem:[#allocation2 + $0x18] sm:$0xff] %vm24_vm1, %v1544_v1  ;;  %v179_v42 = vld [vmem:[%s2466_s0 + $0xd0] sm:$0xff]  ;;  %v392_v44 = vsel %vm217_vm0, %v211_v38, 0.0  ;;  %v353_v54 = vsel %vm217_vm0, %v198_v48, 0.0  ;;  %v213_v61 = vld [vmem:[%s2466_s0 + $0x1e0] sm:$0xff]  ;;  %vm1051_vm7 = vcmask 458112  }
  0x11   :  { %30 = vst.msk [vmem:[#allocation2 + $0x28] sm:$0xff] %vm24_vm1, %v1544_v1  ;;  %v199_v62 = vld [vmem:[%s2466_s0 + $0x170] sm:$0xff]  ;;  %v181_v4 = vld [vmem:[%s2466_s0 + $0xe0] sm:$0xff]  ;;  %v398_v10 = vsel %vm217_vm0, %v213_v61, 0.0  ;;  %vm1055_vm8 = vcmask 523712   ;;  %vm1059_vm9 = vcmask 589312  }
  0x12   :  { %31 = vst.msk [vmem:[#allocation2 + $0x30] sm:$0xff] %vm24_vm1, %v1544_v1  ;;  %v356_v11 = vsel %vm217_vm0, %v199_v62, 0.0  ;;  %vm1063_vm10 = vcmask 654912   ;;  %vm1067_vm11 = vcmask 720512   ;;  %vm1071_vm12 = vcmask 786112  }
  0x13   :  { %243 = vadd.xlane.f32.xlu2 %v242_v15  ;;  %240 = vadd.xlane.f32.xlu1 %v239_v16  ;;  %32 = vst.msk [vmem:[#allocation2 + $0x38] sm:$0xff] %vm24_vm1, %v1544_v1  ;;  %v208_v15 = vld [vmem:[%s2466_s0 + $0x1b8] sm:$0xff]  ;;  %v194_v16 = vld [vmem:[%s2466_s0 + $0x148] sm:$0xff]  ;;  %vm1075_vm13 = vcmask 851712   ;;  %vm1079_vm14 = vcmask 917312   ;;  %vm1083_vm15 = vcmask 982912  }
  0x14   :  { %237 = vadd.xlane.f32.xlu0 %v236_v17  ;;  %33 = vst.msk [vmem:[#allocation2 + $0x40] sm:$0xff] %vm24_vm1, %v1544_v1  ;;  %v176_v17 = vld [vmem:[%s2466_s0 + $0xb8] sm:$0xff]  ;;  %v383_v18 = vsel %vm217_vm0, %v208_v15, 0.0  ;;  %v341_v19 = vsel %vm217_vm0, %v194_v16, 0.0 }
  0x15   :  { %34 = vst.msk [vmem:[#allocation2 + $0x48] sm:$0xff] %vm24_vm1, %v1544_v1  ;;  %v287_v20 = vsel %vm217_vm0, %v176_v17, 0.0 }
  0x16   :  { %35 = vst.msk [vmem:[#allocation2 + $0x50] sm:$0xff] %vm24_vm1, %v1544_v1  ;;  %v91_v56 = vld [vmem:[#allocation2 + $0x10] sm:$0xff] }
  0x17   :  { %36 = vst.msk [vmem:[#allocation2 + $0x58] sm:$0xff] %vm24_vm1, %v1544_v1  ;;  %v92_v60 = vld [vmem:[#allocation2 + $0x18] sm:$0xff] }
  0x18   :  { %37 = vst.msk [vmem:[#allocation2 + $0x60] sm:$0xff] %vm24_vm1, %v1544_v1 }
  0x19   :  { %38 = vst.msk [vmem:[#allocation2 + $0x68] sm:$0xff] %vm24_vm1, %v1544_v1 }
  0x1a   :  { %39 = vst.msk [vmem:[#allocation2 + $0x70] sm:$0xff] %vm24_vm1, %v1544_v1  ;;  %v96_v9 = vld [vmem:[#allocation2 + $0x38] sm:$0xff] }
  0x1b   :  { %252 = vadd.xlane.f32.xlu2 %v251_v21  ;;  %249 = vadd.xlane.f32.xlu1 %v248_v22  ;;  %40 = vst.msk [vmem:[#allocation2 + $0x78] sm:$0xff] %vm24_vm1, %v1544_v1  ;;  %v209_v21 = vld [vmem:[%s2466_s0 + $0x1c0] sm:$0xff]  ;;  %v195_v22 = vld [vmem:[%s2466_s0 + $0x150] sm:$0xff] }
  0x1c   :  { %246 = vadd.xlane.f32.xlu0 %v245_v23  ;;  %41 = vst.msk [vmem:[#allocation2 + $0x80] sm:$0xff] %vm24_vm1, %v1544_v1  ;;  %v177_v23 = vld [vmem:[%s2466_s0 + $0xc0] sm:$0xff]  ;;  %v386_v24 = vsel %vm217_vm0, %v209_v21, 0.0  ;;  %v344_v25 = vsel %vm217_vm0, %v195_v22, 0.0  ;;  %v214_v22 = vld [vmem:[%s2466_s0 + $0x1e8] sm:$0xff] }
  0x1d   :  { %42 = vst.msk [vmem:[#allocation2 + $0x88] sm:$0xff] %vm24_vm1, %v1544_v1  ;;  %v290_v26 = vsel %vm217_vm0, %v177_v23, 0.0  ;;  %v200_v23 = vld [vmem:[%s2466_s0 + $0x178] sm:$0xff] }
  0x1e   :  { %43 = vst.msk [vmem:[#allocation2 + $0x90] sm:$0xff] %vm24_vm1, %v1544_v1  ;;  %v100_v16 = vld [vmem:[#allocation2 + $0x58] sm:$0xff] }
  0x1f   :  { %44 = vst.msk [vmem:[#allocation2 + $0x98] sm:$0xff] %vm24_vm1, %v1544_v1 }
  0x20   :  { %45 = vst.msk [vmem:[#allocation2 + $0xa0] sm:$0xff] %vm24_vm1, %v1544_v1 }
  0x21   :  { %46 = vst.msk [vmem:[#allocation2 + $0xa8] sm:$0xff] %vm24_vm1, %v1544_v1  ;;  %v103_v21 = vld [vmem:[#allocation2 + $0x70] sm:$0xff] }
  0x22   :  { %47 = vst.msk [vmem:[#allocation2 + $0xb0] sm:$0xff] %vm24_vm1, %v1544_v1 }
  0x23   :  { %261 = vadd.xlane.f32.xlu2 %v260_v27  ;;  %258 = vadd.xlane.f32.xlu1 %v257_v28  ;;  %48 = vst.msk [vmem:[#allocation2 + $0xb8] sm:$0xff] %vm24_vm1, %v1544_v1  ;;  %v93_v27 = vld [vmem:[#allocation2 + $0x20] sm:$0xff]  ;;  %v210_v28 = vld [vmem:[%s2466_s0 + $0x1c8] sm:$0xff] }
  0x24   :  { %255 = vadd.xlane.f32.xlu0 %v254_v29  ;;  %49 = vst.msk [vmem:[#allocation2 + $0xc0] sm:$0xff] %vm24_vm1, %v1544_v1  ;;  %v196_v29 = vld [vmem:[%s2466_s0 + $0x158] sm:$0xff]  ;;  %v106_v38 = vld [vmem:[#allocation2 + $0x88] sm:$0xff] }
  0x25   :  { %50 = vst.msk [vmem:[#allocation2 + $0xc8] sm:$0xff] %vm24_vm1, %v1544_v1  ;;  %v347_v36 = vsel %vm217_vm0, %v196_v29, 0.0 }
  0x26   :  { %51 = vst.msk [vmem:[#allocation2 + $0xd0] sm:$0xff] %vm24_vm1, %v1544_v1 }
  0x27   :  { %52 = vst.msk [vmem:[#allocation2 + $0xd8] sm:$0xff] %vm24_vm1, %v1544_v1 }
  0x28   :  { %53 = vst.msk [vmem:[#allocation2 + $0xe0] sm:$0xff] %vm24_vm1, %v1544_v1 }
  0x29   :  { %54 = vst.msk [vmem:[#allocation2 + $0xe8] sm:$0xff] %vm24_vm1, %v1544_v1 }
  0x2a   :  { %55 = vst.msk [vmem:[#allocation2 + $0xf0] sm:$0xff] %vm24_vm1, %v1544_v1 }
  0x2b   :  { %270 = vadd.xlane.f32.xlu2 %v269_v33  ;;  %267 = vadd.xlane.f32.xlu1 %v266_v34  ;;  %56 = vst.msk [vmem:[#allocation2 + $0xf8] sm:$0xff] %vm24_vm1, %v1544_v1 }
  0x2c   :  { %264 = vadd.xlane.f32.xlu0 %v263_v35  ;;  %57 = vst.msk [vmem:[#allocation2 + $0x100] sm:$0xff] %vm24_vm1, %v1544_v1  ;;  %v389_v35 = vsel %vm217_vm0, %v210_v28, 0.0  ;;  %v182_v28 = vld [vmem:[%s2466_s0 + $0xe8] sm:$0xff] }
  0x2d   :  { %58 = vst.msk [vmem:[#allocation2 + $0x108] sm:$0xff] %vm24_vm1, %v1544_v1 }
  0x2e   :  { %59 = vst.msk [vmem:[#allocation2 + $0x110] sm:$0xff] %vm24_vm1, %v1544_v1 }
  0x2f   :  { %60 = vst.msk [vmem:[#allocation2 + $0x118] sm:$0xff] %vm24_vm1, %v1544_v1 }
  0x30   :  { %61 = vst.msk [vmem:[#allocation2 + $0x120] sm:$0xff] %vm24_vm1, %v1544_v1 }
  0x31   :  { %62 = vst.msk [vmem:[#allocation2 + $0x128] sm:$0xff] %vm24_vm1, %v1544_v1 }
  0x32   :  { %63 = vst.msk [vmem:[#allocation2 + $0x130] sm:$0xff] %vm24_vm1, %v1544_v1 }
  0x33   :  { %315 = vadd.xlane.f32.xlu2 %v314_v39  ;;  %276 = vadd.xlane.f32.xlu1 %v275_v40  ;;  %64 = vst.msk [vmem:[#allocation2 + $0x138] sm:$0xff] %vm24_vm1, %v1544_v1  ;;  %v197_v39 = vld [vmem:[%s2466_s0 + $0x160] sm:$0xff] }
  0x34   :  { %273 = vadd.xlane.f32.xlu0 %v272_v41  ;;  %65 = vst.msk [vmem:[#allocation2 + $0x140] sm:$0xff] %vm24_vm1, %v1544_v1 }
  0x35   :  { %66 = vst.msk [vmem:[#allocation2 + $0x148] sm:$0xff] %vm24_vm1, %v1544_v1 }
  0x36   :  { %67 = vst.msk [vmem:[#allocation2 + $0x150] sm:$0xff] %vm24_vm1, %v1544_v1 }
  0x37   :  { %68 = vst.msk [vmem:[#allocation2 + $0x158] sm:$0xff] %vm24_vm1, %v1544_v1 }
  0x38   :  { %69 = vst.msk [vmem:[#allocation2 + $0x160] sm:$0xff] %vm24_vm1, %v1544_v1 }
  0x39   :  { %70 = vst.msk [vmem:[#allocation2 + $0x168] sm:$0xff] %vm24_vm1, %v1544_v1 }
  0x3a   :  { %71 = vst.msk [vmem:[#allocation2 + $0x170] sm:$0xff] %vm24_vm1, %v1544_v1 }
  0x3b   :  { %324 = vadd.xlane.f32.xlu2 %v323_v45  ;;  %321 = vadd.xlane.f32.xlu1 %v320_v46  ;;  %72 = vst.msk [vmem:[#allocation2 + $0x178] sm:$0xff] %vm24_vm1, %v1544_v1  ;;  %v350_v45 = vsel %vm217_vm0, %v197_v39, 0.0  ;;  %v296_v46 = vsel %vm217_vm0, %v179_v42, 0.0  ;;  %v105_v39 = vld [vmem:[#allocation2 + $0x80] sm:$0xff]  ;;  %v184_v42 = vld [vmem:[%s2466_s0 + $0xf8] sm:$0xff] }
  0x3c   :  { %318 = vadd.xlane.f32.xlu0 %v317_v47  ;;  %73 = vst.msk [vmem:[#allocation2 + $0x180] sm:$0xff] %vm24_vm1, %v1544_v1  ;;  %v212_v47 = vld [vmem:[%s2466_s0 + $0x1d8] sm:$0xff] }
  0x3d   :  { %74 = vst.msk [vmem:[#allocation2 + $0x188] sm:$0xff] %vm24_vm1, %v1544_v1 }
  0x3e   :  { %75 = vst.msk [vmem:[#allocation2 + $0x190] sm:$0xff] %vm24_vm1, %v1544_v1 }
  0x3f   :  { %76 = vst.msk [vmem:[#allocation2 + $0x198] sm:$0xff] %vm24_vm1, %v1544_v1 }
  0x40   :  { %77 = vst.msk [vmem:[#allocation2 + $0x1a0] sm:$0xff] %vm24_vm1, %v1544_v1 }
  0x41   :  { %78 = vst.msk [vmem:[#allocation2 + $0x1a8] sm:$0xff] %vm24_vm1, %v1544_v1 }
  0x42   :  { %79 = vst.msk [vmem:[#allocation2 + $0x1b0] sm:$0xff] %vm24_vm1, %v1544_v1 }
  0x43   :  { %327 = vadd.xlane.f32.xlu2 %v326_v51  ;;  %366 = vadd.xlane.f32.xlu1 %v365_v52  ;;  %v180_v51 = vld [vmem:[%s2466_s0 + $0xd8] sm:$0xff]  ;;  %80 = vst.msk [vmem:[#allocation2 + $0x1b8] sm:$0xff] %vm24_vm1, %v1544_v1 }
  0x44   :  { %363 = vadd.xlane.f32.xlu0 %v362_v53  ;;  %v395_v53 = vsel %vm217_vm0, %v212_v47, 0.0  ;;  %81 = vst.msk [vmem:[#allocation2 + $0x1c0] sm:$0xff] %vm24_vm1, %v1544_v1  ;;  %v299_v55 = vsel %vm217_vm0, %v180_v51, 0.0  ;;  %v311_v51 = vsel %vm217_vm0, %v184_v42, 0.0 }
  0x45   :  { %82 = vst.msk [vmem:[#allocation2 + $0x1c8] sm:$0xff] %vm24_vm1, %v1544_v1 }
  0x46   :  { %83 = vst.msk [vmem:[#allocation2 + $0x1d0] sm:$0xff] %vm24_vm1, %v1544_v1 }
  0x47   :  { %84 = vst.msk [vmem:[#allocation2 + $0x1d8] sm:$0xff] %vm24_vm1, %v1544_v1 }
  0x48   :  { %85 = vst.msk [vmem:[#allocation2 + $0x1e0] sm:$0xff] %vm24_vm1, %v1544_v1 }
  0x49   :  { %86 = vst.msk [vmem:[#allocation2 + $0x1e8] sm:$0xff] %vm24_vm1, %v1544_v1 }
  0x4a   :  { %87 = vst.msk [vmem:[#allocation2 + $0x1f0] sm:$0xff] %vm24_vm1, %v1544_v1 }
  0x4b   :  { %372 = vadd.xlane.f32.xlu2 %v371_v57  ;;  %330 = vadd.xlane.f32.xlu1 %v329_v58  ;;  %v89_v57 = vld [vmem:[#allocation2] sm:$0xff]  ;;  %v94_v58 = vld [vmem:[#allocation2 + $0x28] sm:$0xff]  ;;  %88 = vst.msk [vmem:[#allocation2 + $0x1f8] sm:$0xff] %vm24_vm1, %v1544_v1  ;;  %v99_v1 = vld [vmem:[#allocation2 + $0x50] sm:$0xff] }
  0x4c   :  { %369 = vadd.xlane.f32.xlu0 %v368_v59 }
  0x53   :  { %375 = vadd.xlane.f32.xlu2 %v374_v63  ;;  %333 = vadd.xlane.f32.xlu1 %v332_v0  ;;  %v90_v0 = vld [vmem:[#allocation2 + $0x8] sm:$0xff] }
  0x54   :  { %279 = vadd.xlane.f32.xlu0 %v278_v2 }
  0x5b   :  { %378 = vadd.xlane.f32.xlu2 %v377_v6  ;;  %336 = vadd.xlane.f32.xlu1 %v335_v7  ;;  %v97_v6 = vld [vmem:[#allocation2 + $0x40] sm:$0xff] }
  0x5c   :  { %282 = vadd.xlane.f32.xlu0 %v281_v8 }
  0x63   :  { %381 = vadd.xlane.f32.xlu2 %v380_v12  ;;  %339 = vadd.xlane.f32.xlu1 %v338_v13  ;;  %v95_v13 = vld [vmem:[#allocation2 + $0x30] sm:$0xff] }
  0x64   :  { %285 = vadd.xlane.f32.xlu0 %v284_v14  ;;  %v302_v14 = vsel %vm217_vm0, %v181_v4, 0.0  ;;  %v122_v4 = vld [vmem:[#allocation2 + $0x108] sm:$0xff] }
  0x6b   :  { %384 = vadd.xlane.f32.xlu2 %v383_v18  ;;  %342 = vadd.xlane.f32.xlu1 %v341_v19  ;;  %v98_v19 = vld [vmem:[#allocation2 + $0x48] sm:$0xff] }
  0x6c   :  { %288 = vadd.xlane.f32.xlu0 %v287_v20 }
  0x73   :  { %387 = vadd.xlane.f32.xlu2 %v386_v24  ;;  %345 = vadd.xlane.f32.xlu1 %v344_v25 }
  0x74   :  { %291 = vadd.xlane.f32.xlu0 %v290_v26  ;;  %v102_v26 = vld [vmem:[#allocation2 + $0x68] sm:$0xff] }
  0x76   :  { %v232_v30 = vpop.xlane.xlu2 %231  ;;  %v226_v31 = vpop.xlane.xlu1 %225 }
  0x77   :  { %v414_v33 = vadd.f32 %v232_v30, %v93_v27  ;;  %v220_v34 = vpop.xlane.xlu0 %219  ;;  %v412_v59 = vadd.f32 %v226_v31, %v91_v56  ;;  %v101_v30 = vld [vmem:[#allocation2 + $0x60] sm:$0xff]  ;;  %v107_v56 = vld [vmem:[#allocation2 + $0x90] sm:$0xff] }
  0x78   :  { %v410_v63 = vadd.f32 %v220_v34, %v89_v57  ;;  %v359_v34 = vsel %vm217_vm0, %v200_v23, 0.0 }
  0x79   :  { %479 = vst.msk [vmem:[#allocation2 + $0x20] sm:$0xff] %vm24_vm1, %v414_v33  ;;  %v401_v33 = vsel %vm217_vm0, %v214_v22, 0.0 }
  0x7a   :  { %477 = vst.msk [vmem:[#allocation2 + $0x10] sm:$0xff] %vm24_vm1, %v412_v59  ;;  %v216_v59 = vld [vmem:[%s2466_s0 + $0x1f8] sm:$0xff] }
  0x7b   :  { %390 = vadd.xlane.f32.xlu2 %v389_v35  ;;  %348 = vadd.xlane.f32.xlu1 %v347_v36  ;;  %475 = vst.msk [vmem:[#allocation2] sm:$0xff] %vm24_vm1, %v410_v63  ;;  %v305_v36 = vsel %vm217_vm0, %v182_v28, 0.0 }
  0x7c   :  { %294 = vadd.xlane.f32.xlu0 %v293_v37 }
  0x7e   :  { %v235_v40 = vpop.xlane.xlu2 %234  ;;  %v229_v41 = vpop.xlane.xlu1 %228 }
  0x7f   :  { %v223_v43 = vpop.xlane.xlu0 %222  ;;  %v415_v5 = vadd.f32 %v235_v40, %v94_v58  ;;  %v413_v8 = vadd.f32 %v229_v41, %v92_v60  ;;  %v1545_v40 = vmov 0   ;;  %v104_v41 = vld [vmem:[#allocation2 + $0x78] sm:$0xff] }
  0x80   :  { %v411_v12 = vadd.f32 %v223_v43, %v90_v0  ;;  %1367 = vset.pattern.permute.xlu1 %v1545_v40  ;;  %v215_v43 = vld [vmem:[%s2466_s0 + $0x1f0] sm:$0xff]  ;;  %1373 = vset.pattern.permute.xlu2 %v1545_v40  ;;  %v407_v0 = vsel %vm217_vm0, %v216_v59, 0.0 }
  0x81   :  { %480 = vst.msk [vmem:[#allocation2 + $0x28] sm:$0xff] %vm24_vm1, %v415_v5  ;;  %1379 = vset.pattern.permute.xlu0 %v1545_v40 }
  0x82   :  { %478 = vst.msk [vmem:[#allocation2 + $0x18] sm:$0xff] %vm24_vm1, %v413_v8 }
  0x83   :  { %393 = vadd.xlane.f32.xlu2 %v392_v44  ;;  %351 = vadd.xlane.f32.xlu1 %v350_v45  ;;  %476 = vst.msk [vmem:[#allocation2 + $0x8] sm:$0xff] %vm24_vm1, %v411_v12  ;;  %v125_v12 = vld [vmem:[#allocation2 + $0x120] sm:$0xff] }
  0x84   :  { %297 = vadd.xlane.f32.xlu0 %v296_v46  ;;  %v183_v46 = vld [vmem:[%s2466_s0 + $0xf0] sm:$0xff] }
  0x86   :  { %v244_v49 = vpop.xlane.xlu2 %243  ;;  %v241_v50 = vpop.xlane.xlu1 %240 }
  0x87   :  { %v238_v52 = vpop.xlane.xlu0 %237  ;;  %v418_v15 = vadd.f32 %v244_v49, %v97_v6  ;;  %v417_v17 = vadd.f32 %v241_v50, %v96_v9 }
  0x88   :  { %v416_v18 = vadd.f32 %v238_v52, %v95_v13  ;;  %v404_v52 = vsel %vm217_vm0, %v215_v43, 0.0  ;;  %v138_v13 = vld [vmem:[#allocation2 + $0x188] sm:$0xff] }
  0x89   :  { %483 = vst.msk [vmem:[#allocation2 + $0x40] sm:$0xff] %vm24_vm1, %v418_v15  ;;  %v542_v15 = vld [vmem:[#allocation2] sm:$0xff] }
  0x8a   :  { %482 = vst.msk [vmem:[#allocation2 + $0x38] sm:$0xff] %vm24_vm1, %v417_v17  ;;  %v670_v23 = vmul.f32 0.015625, %v542_v15  ;;  %v128_v15 = vld [vmem:[#allocation2 + $0x138] sm:$0xff] }
  0x8b   :  { %396 = vadd.xlane.f32.xlu2 %v395_v53  ;;  %354 = vadd.xlane.f32.xlu1 %v353_v54  ;;  %481 = vst.msk [vmem:[#allocation2 + $0x30] sm:$0xff] %vm24_vm1, %v416_v18  ;;  %v308_v53 = vsel %vm217_vm0, %v183_v46, 0.0  ;;  %v121_v54 = vld [vmem:[#allocation2 + $0x100] sm:$0xff]  ;;  %vm1087_vm0 = vcmask 1048512  }
  0x8c   :  { %300 = vadd.xlane.f32.xlu0 %v299_v55  ;;  %v108_v55 = vld [vmem:[#allocation2 + $0x98] sm:$0xff] }
  0x8e   :  { %v253_v2 = vpop.xlane.xlu2 %252  ;;  %v250_v3 = vpop.xlane.xlu1 %249 }
  0x8f   :  { %v247_v7 = vpop.xlane.xlu0 %246  ;;  %v421_v20 = vadd.f32 %v253_v2, %v100_v16  ;;  %v420_v24 = vadd.f32 %v250_v3, %v99_v1  ;;  %v124_v2 = vld [vmem:[#allocation2 + $0x118] sm:$0xff]  ;;  %v123_v3 = vld [vmem:[#allocation2 + $0x110] sm:$0xff] }
  0x90   :  { %v419_v29 = vadd.f32 %v247_v7, %v98_v19 }
  0x91   :  { %486 = vst.msk [vmem:[#allocation2 + $0x58] sm:$0xff] %vm24_vm1, %v421_v20 }
  0x92   :  { %485 = vst.msk [vmem:[#allocation2 + $0x50] sm:$0xff] %vm24_vm1, %v420_v24 }
  0x93   :  { %399 = vadd.xlane.f32.xlu2 %v398_v10  ;;  %357 = vadd.xlane.f32.xlu1 %v356_v11  ;;  %484 = vst.msk [vmem:[#allocation2 + $0x48] sm:$0xff] %vm24_vm1, %v419_v29  ;;  %v543_v11 = vld [vmem:[#allocation2 + $0x8] sm:$0xff] }
  0x94   :  { %303 = vadd.xlane.f32.xlu0 %v302_v14  ;;  %v137_v14 = vld [vmem:[#allocation2 + $0x180] sm:$0xff]  ;;  %v671_v1 = vmul.f32 0.015625, %v543_v11 }
  0x96   :  { %v262_v25 = vpop.xlane.xlu2 %261  ;;  %v259_v27 = vpop.xlane.xlu1 %258 }
  0x97   :  { %v256_v31 = vpop.xlane.xlu0 %255  ;;  %v424_v32 = vadd.f32 %v262_v25, %v103_v21  ;;  %v423_v35 = vadd.f32 %v259_v27, %v102_v26  ;;  %v544_v25 = vld [vmem:[#allocation2 + $0x10] sm:$0xff]  ;;  %v1368_v27 = vpack.i.bf16 %v671_v1, %v670_v23  ;;  %v547_v1 = vld [vmem:[#allocation2 + $0x28] sm:$0xff] }
  0x98   :  { %v422_v37 = vadd.f32 %v256_v31, %v101_v30 }
  0x99   :  { %489 = vst.msk [vmem:[#allocation2 + $0x70] sm:$0xff] %vm24_vm1, %v424_v32  ;;  %v140_v32 = vld [vmem:[#allocation2 + $0x198] sm:$0xff] }
  0x9a   :  { %488 = vst.msk [vmem:[#allocation2 + $0x68] sm:$0xff] %vm24_vm1, %v423_v35 }
  0x9b   :  { %402 = vadd.xlane.f32.xlu2 %v401_v33  ;;  %360 = vadd.xlane.f32.xlu1 %v359_v34  ;;  %487 = vst.msk [vmem:[#allocation2 + $0x60] sm:$0xff] %vm24_vm1, %v422_v37  ;;  %v126_v33 = vld [vmem:[#allocation2 + $0x128] sm:$0xff]  ;;  %v672_v34 = vmul.f32 0.015625, %v544_v25 }
  0x9c   :  { %306 = vadd.xlane.f32.xlu0 %v305_v36  ;;  %v139_v36 = vld [vmem:[#allocation2 + $0x190] sm:$0xff] }
  0x9e   :  { %v271_v44 = vpop.xlane.xlu2 %270  ;;  %v268_v45 = vpop.xlane.xlu1 %267 }
  0x9f   :  { %v427_v47 = vadd.f32 %v271_v44, %v106_v38  ;;  %v426_v48 = vadd.f32 %v268_v45, %v105_v39  ;;  %v265_v49 = vpop.xlane.xlu0 %264 }
  0xa0   :  { %v425_v50 = vadd.f32 %v265_v49, %v104_v41 }
  0xa1   :  { %492 = vst.msk [vmem:[#allocation2 + $0x88] sm:$0xff] %vm24_vm1, %v427_v47 }
  0xa2   :  { %491 = vst.msk [vmem:[#allocation2 + $0x80] sm:$0xff] %vm24_vm1, %v426_v48  ;;  %v545_v48 = vld [vmem:[#allocation2 + $0x18] sm:$0xff] }
  0xa3   :  { %490 = vst.msk [vmem:[#allocation2 + $0x78] sm:$0xff] %vm24_vm1, %v425_v50  ;;  %312 = vadd.xlane.f32.xlu2 %v311_v51  ;;  %405 = vadd.xlane.f32.xlu1 %v404_v52  ;;  %v673_v51 = vmul.f32 0.015625, %v545_v48 }
  0xa4   :  { %309 = vadd.xlane.f32.xlu0 %v308_v53  ;;  %v141_v53 = vld [vmem:[#allocation2 + $0x1a0] sm:$0xff] }
  0xa6   :  { %v316_v57 = vpop.xlane.xlu2 %315  ;;  %v277_v58 = vpop.xlane.xlu1 %276 }
  0xa7   :  { %v442_v60 = vadd.f32 %v316_v57, %v121_v54  ;;  %v429_v61 = vadd.f32 %v277_v58, %v108_v55  ;;  %v274_v62 = vpop.xlane.xlu0 %273  ;;  %v127_v54 = vld [vmem:[#allocation2 + $0x130] sm:$0xff]  ;;  %v546_v57 = vld [vmem:[#allocation2 + $0x20] sm:$0xff] }
  0xa8   :  { %v428_v63 = vadd.f32 %v274_v62, %v107_v56  ;;  %v559_v37 = vld [vmem:[#allocation2 + $0x88] sm:$0xff]  ;;  %v109_v56 = vld [vmem:[#allocation2 + $0xa0] sm:$0xff] }
  0xa9   :  { %507 = vst.msk [vmem:[#allocation2 + $0x100] sm:$0xff] %vm24_vm1, %v442_v60  ;;  %v558_v42 = vld [vmem:[#allocation2 + $0x80] sm:$0xff]  ;;  %v687_v47 = vmul.f32 0.015625, %v559_v37 }
  0xaa   :  { %494 = vst.msk [vmem:[#allocation2 + $0x98] sm:$0xff] %vm24_vm1, %v429_v61  ;;  %v686_v49 = vmul.f32 0.015625, %v558_v42 }
  0xab   :  { %493 = vst.msk [vmem:[#allocation2 + $0x90] sm:$0xff] %vm24_vm1, %v428_v63 }
  0xac   :  { %408 = vadd.xlane.f32.xlu0 %v407_v0  ;;  %v1385_v55 = vpack.i.bf16 %v686_v49, %v673_v51 }
  0xae   :  { %v325_v5 = vpop.xlane.xlu2 %324  ;;  %v322_v6 = vpop.xlane.xlu1 %321 }
  0xaf   :  { %v445_v7 = vadd.f32 %v325_v5, %v124_v2  ;;  %v444_v8 = vadd.f32 %v322_v6, %v123_v3  ;;  %v319_v9 = vpop.xlane.xlu0 %318 }
  0xb0   :  { %v443_v10 = vadd.f32 %v319_v9, %v122_v4  ;;  %v574_v18 = vld [vmem:[#allocation2 + $0x100] sm:$0xff]  ;;  %v674_v4 = vmul.f32 0.015625, %v546_v57 }
  0xb1   :  { %510 = vst.msk [vmem:[#allocation2 + $0x118] sm:$0xff] %vm24_vm1, %v445_v7  ;;  %v702_v24 = vmul.f32 0.015625, %v574_v18 }
  0xb2   :  { %509 = vst.msk [vmem:[#allocation2 + $0x110] sm:$0xff] %vm24_vm1, %v444_v8  ;;  %v560_v52 = vld [vmem:[#allocation2 + $0x90] sm:$0xff] }
  0xb3   :  { %508 = vst.msk [vmem:[#allocation2 + $0x108] sm:$0xff] %vm24_vm1, %v443_v10  ;;  %v688_v60 = vmul.f32 0.015625, %v560_v52 }
  0xb5   :  { %v1400_v10 = vpack.i.bf16 %v688_v60, %v674_v4 }
  0xb6   :  { %v328_v16 = vpop.xlane.xlu2 %327  ;;  %v367_v17 = vpop.xlane.xlu1 %366 }
  0xb7   :  { %v446_v19 = vadd.f32 %v328_v16, %v125_v12  ;;  %v459_v20 = vadd.f32 %v367_v17, %v138_v13  ;;  %v364_v21 = vpop.xlane.xlu0 %363  ;;  %v561_v12 = vld [vmem:[#allocation2 + $0x98] sm:$0xff]  ;;  %v110_v17 = vld [vmem:[#allocation2 + $0xa8] sm:$0xff] }
  0xb8   :  { %v458_v22 = vadd.f32 %v364_v21, %v137_v14  ;;  %v577_v31 = vld [vmem:[#allocation2 + $0x118] sm:$0xff]  ;;  %v142_v14 = vld [vmem:[#allocation2 + $0x1a8] sm:$0xff] }
  0xb9   :  { %511 = vst.msk [vmem:[#allocation2 + $0x120] sm:$0xff] %vm24_vm1, %v446_v19  ;;  %v576_v26 = vld [vmem:[#allocation2 + $0x110] sm:$0xff]  ;;  %v705_v41 = vmul.f32 0.015625, %v577_v31 }
  0xba   :  { %524 = vst.msk [vmem:[#allocation2 + $0x188] sm:$0xff] %vm24_vm1, %v459_v20  ;;  %v575_v28 = vld [vmem:[#allocation2 + $0x108] sm:$0xff]  ;;  %v704_v29 = vmul.f32 0.015625, %v576_v26  ;;  %v689_v20 = vmul.f32 0.015625, %v561_v12 }
  0xbb   :  { %523 = vst.msk [vmem:[#allocation2 + $0x180] sm:$0xff] %vm24_vm1, %v458_v22  ;;  %v703_v30 = vmul.f32 0.015625, %v575_v28  ;;  %v1390_v50 = vpack.i.bf16 %v705_v41, %v687_v47  ;;  %v549_v47 = vld [vmem:[#allocation2 + $0x38] sm:$0xff] }
  0xbc   :  { %1369 = vperm.xlu1 %1367, %v1368_v27   ;;  %v1380_v40 = vpack.i.bf16 %v704_v29, %v672_v34  ;;  %v675_v27 = vmul.f32 0.015625, %v547_v1  ;;  %v129_v34 = vld [vmem:[#allocation2 + $0x140] sm:$0xff]  ;;  %v677_v52 = vmul.f32 0.015625, %v549_v47 }
  0xbd   :  { %v1374_v35 = vpack.i.bf16 %v703_v30, %v702_v24 }
  0xbe   :  { %v373_v38 = vpop.xlane.xlu2 %372  ;;  %v331_v39 = vpop.xlane.xlu1 %330  ;;  %v1410_v30 = vpack.i.bf16 %v689_v20, %v675_v27 }
  0xbf   :  { %1375 = vperm.xlu2 %1373, %v1374_v35   ;;  %v461_v43 = vadd.f32 %v373_v38, %v140_v32  ;;  %v447_v44 = vadd.f32 %v331_v39, %v126_v33  ;;  %v370_v45 = vpop.xlane.xlu0 %369  ;;  %v143_v33 = vld [vmem:[#allocation2 + $0x1b0] sm:$0xff] }
  0xc0   :  { %v460_v46 = vadd.f32 %v370_v45, %v139_v36  ;;  %1381 = vperm.xlu0 %1379, %v1380_v40   ;;  %v578_v21 = vld [vmem:[#allocation2 + $0x120] sm:$0xff]  ;;  %v111_v36 = vld [vmem:[#allocation2 + $0xb0] sm:$0xff] }
  0xc1   :  { %526 = vst.msk [vmem:[#allocation2 + $0x198] sm:$0xff] %vm24_vm1, %v461_v43  ;;  %v591_v62 = vld [vmem:[#allocation2 + $0x188] sm:$0xff]  ;;  %v706_v28 = vmul.f32 0.015625, %v578_v21 }
  0xc2   :  { %512 = vst.msk [vmem:[#allocation2 + $0x128] sm:$0xff] %vm24_vm1, %v447_v44  ;;  %v590_v61 = vld [vmem:[#allocation2 + $0x180] sm:$0xff]  ;;  %v719_v9 = vmul.f32 0.015625, %v591_v62 }
  0xc3   :  { %525 = vst.msk [vmem:[#allocation2 + $0x190] sm:$0xff] %vm24_vm1, %v460_v46  ;;  %v718_v8 = vmul.f32 0.015625, %v590_v61  ;;  %v548_v46 = vld [vmem:[#allocation2 + $0x30] sm:$0xff] }
  0xc4   :  { %1391 = vperm.xlu1 %1367, %v1390_v50   ;;  %v676_v51 = vmul.f32 0.015625, %v548_v46 }
  0xc5   :  { %v1395_v16 = vpack.i.bf16 %v719_v9, %v718_v8 }
  0xc6   :  { %v376_v58 = vpop.xlane.xlu2 %375  ;;  %v334_v59 = vpop.xlane.xlu1 %333 }
  0xc7   :  { %1386 = vperm.xlu2 %1373, %v1385_v55   ;;  %v462_v63 = vadd.f32 %v376_v58, %v141_v53  ;;  %v448_v0 = vadd.f32 %v334_v59, %v127_v54  ;;  %v280_v2 = vpop.xlane.xlu0 %279  ;;  %v144_v54 = vld [vmem:[#allocation2 + $0x1b8] sm:$0xff]  ;;  %v130_v55 = vld [vmem:[#allocation2 + $0x148] sm:$0xff] }
  0xc8   :  { %v430_v3 = vadd.f32 %v280_v2, %v109_v56  ;;  %v593_v5 = vld [vmem:[#allocation2 + $0x198] sm:$0xff] }
  0xc9   :  { %527 = vst.msk [vmem:[#allocation2 + $0x1a0] sm:$0xff] %vm24_vm1, %v462_v63  ;;  %v579_v6 = vld [vmem:[#allocation2 + $0x128] sm:$0xff]  ;;  %v721_v7 = vmul.f32 0.015625, %v593_v5  ;;  %v112_v58 = vld [vmem:[#allocation2 + $0xb8] sm:$0xff]  ;;  %v550_v5 = vld [vmem:[#allocation2 + $0x40] sm:$0xff] }
  0xca   :  { %513 = vst.msk [vmem:[#allocation2 + $0x130] sm:$0xff] %vm24_vm1, %v448_v0  ;;  %v707_v11 = vmul.f32 0.015625, %v579_v6  ;;  %v592_v22 = vld [vmem:[#allocation2 + $0x190] sm:$0xff]  ;;  %v678_v12 = vmul.f32 0.015625, %v550_v5 }
  0xcb   :  { %495 = vst.msk [vmem:[#allocation2 + $0xa0] sm:$0xff] %vm24_vm1, %v430_v3  ;;  %v720_v29 = vmul.f32 0.015625, %v592_v22 }
  0xcc   :  { %1401 = vperm.xlu1 %1367, %v1400_v10   ;;  %v1415_v13 = vpack.i.bf16 %v721_v7, %v707_v11 }
  0xcd   :  { %v1405_v35 = vpack.i.bf16 %v720_v29, %v706_v28 }
  0xce   :  { %1416 = vperm.xlu0 %1379, %v1415_v13   ;;  %v379_v18 = vpop.xlane.xlu2 %378  ;;  %v337_v19 = vpop.xlane.xlu1 %336 }
  0xcf   :  { %1396 = vperm.xlu2 %1373, %v1395_v16   ;;  %v463_v23 = vadd.f32 %v379_v18, %v142_v14  ;;  %v449_v24 = vadd.f32 %v337_v19, %v128_v15  ;;  %v283_v25 = vpop.xlane.xlu0 %282  ;;  %v145_v15 = vld [vmem:[#allocation2 + $0x1c0] sm:$0xff]  ;;  %v131_v16 = vld [vmem:[#allocation2 + $0x150] sm:$0xff] }
  0xd0   :  { %v431_v26 = vadd.f32 %v283_v25, %v110_v17  ;;  %v594_v32 = vld [vmem:[#allocation2 + $0x1a0] sm:$0xff] }
  0xd1   :  { %528 = vst.msk [vmem:[#allocation2 + $0x1a8] sm:$0xff] %vm24_vm1, %v463_v23  ;;  %v580_v31 = vld [vmem:[#allocation2 + $0x130] sm:$0xff]  ;;  %v722_v40 = vmul.f32 0.015625, %v594_v32  ;;  %v113_v18 = vld [vmem:[#allocation2 + $0xc0] sm:$0xff] }
  0xd2   :  { %514 = vst.msk [vmem:[#allocation2 + $0x138] sm:$0xff] %vm24_vm1, %v449_v24  ;;  %v708_v39 = vmul.f32 0.015625, %v580_v31  ;;  %v562_v41 = vld [vmem:[#allocation2 + $0xa0] sm:$0xff] }
  0xd3   :  { %496 = vst.msk [vmem:[#allocation2 + $0xa8] sm:$0xff] %vm24_vm1, %v431_v26  ;;  %v690_v48 = vmul.f32 0.015625, %v562_v41  ;;  %v551_v26 = vld [vmem:[#allocation2 + $0x48] sm:$0xff] }
  0xd4   :  { %1411 = vperm.xlu1 %1367, %v1410_v30   ;;  %v1425_v49 = vpack.i.bf16 %v722_v40, %v708_v39  ;;  %v679_v31 = vmul.f32 0.015625, %v551_v26 }
  0xd5   :  { %v1420_v56 = vpack.i.bf16 %v690_v48, %v676_v51 }
  0xd6   :  { %v382_v37 = vpop.xlane.xlu2 %381  ;;  %v340_v38 = vpop.xlane.xlu1 %339 }
  0xd7   :  { %1406 = vperm.xlu2 %1373, %v1405_v35   ;;  %v464_v42 = vadd.f32 %v382_v37, %v143_v33  ;;  %v450_v43 = vadd.f32 %v340_v38, %v129_v34  ;;  %v286_v44 = vpop.xlane.xlu0 %285  ;;  %v146_v34 = vld [vmem:[#allocation2 + $0x1c8] sm:$0xff]  ;;  %v132_v35 = vld [vmem:[#allocation2 + $0x158] sm:$0xff] }
  0xd8   :  { %v432_v45 = vadd.f32 %v286_v44, %v111_v36  ;;  %v595_v62 = vld [vmem:[#allocation2 + $0x1a8] sm:$0xff] }
  0xd9   :  { %529 = vst.msk [vmem:[#allocation2 + $0x1b0] sm:$0xff] %vm24_vm1, %v464_v42  ;;  %v581_v61 = vld [vmem:[#allocation2 + $0x138] sm:$0xff]  ;;  %v723_v7 = vmul.f32 0.015625, %v595_v62  ;;  %v114_v37 = vld [vmem:[#allocation2 + $0xc8] sm:$0xff] }
  0xda   :  { %515 = vst.msk [vmem:[#allocation2 + $0x140] sm:$0xff] %vm24_vm1, %v450_v43  ;;  %v563_v50 = vld [vmem:[#allocation2 + $0xa8] sm:$0xff]  ;;  %v709_v6 = vmul.f32 0.015625, %v581_v61 }
  0xdb   :  { %497 = vst.msk [vmem:[#allocation2 + $0xb0] sm:$0xff] %vm24_vm1, %v432_v45  ;;  %v691_v53 = vmul.f32 0.015625, %v563_v50  ;;  %v552_v45 = vld [vmem:[#allocation2 + $0x50] sm:$0xff] }
  0xdc   :  { %1426 = vperm.xlu1 %1367, %v1425_v49   ;;  %v1435_v17 = vpack.i.bf16 %v723_v7, %v709_v6  ;;  %v680_v50 = vmul.f32 0.015625, %v552_v45 }
  0xdd   :  { %v1430_v57 = vpack.i.bf16 %v691_v53, %v677_v52  ;;  %v147_v53 = vld [vmem:[#allocation2 + $0x1d0] sm:$0xff] }
  0xde   :  { %v385_v59 = vpop.xlane.xlu2 %384  ;;  %v343_v60 = vpop.xlane.xlu1 %342 }
  0xdf   :  { %1421 = vperm.xlu2 %1373, %v1420_v56   ;;  %1431 = vperm.xlu0 %1379, %v1430_v57   ;;  %v465_v63 = vadd.f32 %v385_v59, %v144_v54  ;;  %v451_v0 = vadd.f32 %v343_v60, %v130_v55  ;;  %v289_v2 = vpop.xlane.xlu0 %288  ;;  %v133_v54 = vld [vmem:[#allocation2 + $0x160] sm:$0xff]  ;;  %v115_v56 = vld [vmem:[#allocation2 + $0xd0] sm:$0xff] }
  0xe0   :  { %v433_v3 = vadd.f32 %v289_v2, %v112_v58  ;;  %v596_v4 = vld [vmem:[#allocation2 + $0x1b0] sm:$0xff] }
  0xe1   :  { %530 = vst.msk [vmem:[#allocation2 + $0x1b8] sm:$0xff] %vm24_vm1, %v465_v63  ;;  %v582_v8 = vld [vmem:[#allocation2 + $0x140] sm:$0xff]  ;;  %v724_v9 = vmul.f32 0.015625, %v596_v4 }
  0xe2   :  { %516 = vst.msk [vmem:[#allocation2 + $0x148] sm:$0xff] %vm24_vm1, %v451_v0  ;;  %v710_v10 = vmul.f32 0.015625, %v582_v8  ;;  %v564_v11 = vld [vmem:[#allocation2 + $0xb0] sm:$0xff]  ;;  %v553_v0 = vld [vmem:[#allocation2 + $0x58] sm:$0xff] }
  0xe3   :  { %498 = vst.msk [vmem:[#allocation2 + $0xb8] sm:$0xff] %vm24_vm1, %v433_v3  ;;  %v692_v13 = vmul.f32 0.015625, %v564_v11  ;;  %v681_v6 = vmul.f32 0.015625, %v553_v0 }
  0xe4   :  { %v1445_v14 = vpack.i.bf16 %v724_v9, %v710_v10  ;;  %v148_v9 = vld [vmem:[#allocation2 + $0x1d8] sm:$0xff]  ;;  %v134_v10 = vld [vmem:[#allocation2 + $0x168] sm:$0xff] }
  0xe5   :  { %v1440_v1 = vpack.i.bf16 %v692_v13, %v678_v12  ;;  %v116_v12 = vld [vmem:[#allocation2 + $0xd8] sm:$0xff] }
  0xe6   :  { %v388_v19 = vpop.xlane.xlu2 %387  ;;  %v346_v20 = vpop.xlane.xlu1 %345 }
  0xe7   :  { %1436 = vperm.xlu2 %1373, %v1435_v17   ;;  %1446 = vperm.xlu0 %1379, %v1445_v14   ;;  %v466_v21 = vadd.f32 %v388_v19, %v145_v15  ;;  %v452_v22 = vadd.f32 %v346_v20, %v131_v16  ;;  %v292_v23 = vpop.xlane.xlu0 %291  ;;  %v554_v19 = vld [vmem:[#allocation2 + $0x60] sm:$0xff] }
  0xe8   :  { %1441 = vperm.xlu1 %1367, %v1440_v1   ;;  %v434_v24 = vadd.f32 %v292_v23, %v113_v18  ;;  %v597_v25 = vld [vmem:[#allocation2 + $0x1b8] sm:$0xff] }
  0xe9   :  { %531 = vst.msk [vmem:[#allocation2 + $0x1c0] sm:$0xff] %vm24_vm1, %v466_v21  ;;  %v583_v27 = vld [vmem:[#allocation2 + $0x148] sm:$0xff]  ;;  %v725_v28 = vmul.f32 0.015625, %v597_v25 }
  0xea   :  { %517 = vst.msk [vmem:[#allocation2 + $0x150] sm:$0xff] %vm24_vm1, %v452_v22  ;;  %v711_v29 = vmul.f32 0.015625, %v583_v27  ;;  %v565_v30 = vld [vmem:[#allocation2 + $0xb8] sm:$0xff]  ;;  %v149_v27 = vld [vmem:[#allocation2 + $0x1e0] sm:$0xff] }
  0xeb   :  { %499 = vst.msk [vmem:[#allocation2 + $0xc0] sm:$0xff] %vm24_vm1, %v434_v24  ;;  %v693_v32 = vmul.f32 0.015625, %v565_v30  ;;  %v682_v24 = vmul.f32 0.015625, %v554_v19  ;;  %v117_v30 = vld [vmem:[#allocation2 + $0xe0] sm:$0xff] }
  0xec   :  { %v1455_v33 = vpack.i.bf16 %v725_v28, %v711_v29  ;;  %v135_v28 = vld [vmem:[#allocation2 + $0x170] sm:$0xff] }
  0xed   :  { %v1450_v36 = vpack.i.bf16 %v693_v32, %v679_v31 }
  0xee   :  { %v391_v38 = vpop.xlane.xlu2 %390  ;;  %v349_v39 = vpop.xlane.xlu1 %348 }
  0xef   :  { %1451 = vperm.xlu2 %1373, %v1450_v36   ;;  %v467_v40 = vadd.f32 %v391_v38, %v146_v34  ;;  %v453_v41 = vadd.f32 %v349_v39, %v132_v35  ;;  %v295_v42 = vpop.xlane.xlu0 %294  ;;  %v555_v38 = vld [vmem:[#allocation2 + $0x68] sm:$0xff] }
  0xf0   :  { %1456 = vperm.xlu1 %1367, %v1455_v33   ;;  %v435_v43 = vadd.f32 %v295_v42, %v114_v37  ;;  %v598_v44 = vld [vmem:[#allocation2 + $0x1c0] sm:$0xff] }
  0xf1   :  { %532 = vst.msk [vmem:[#allocation2 + $0x1c8] sm:$0xff] %vm24_vm1, %v467_v40  ;;  %v584_v46 = vld [vmem:[#allocation2 + $0x150] sm:$0xff]  ;;  %v726_v47 = vmul.f32 0.015625, %v598_v44 }
  0xf2   :  { %518 = vst.msk [vmem:[#allocation2 + $0x158] sm:$0xff] %vm24_vm1, %v453_v41  ;;  %v712_v48 = vmul.f32 0.015625, %v584_v46  ;;  %v566_v49 = vld [vmem:[#allocation2 + $0xc0] sm:$0xff]  ;;  %v150_v46 = vld [vmem:[#allocation2 + $0x1e8] sm:$0xff] }
  0xf3   :  { %500 = vst.msk [vmem:[#allocation2 + $0xc8] sm:$0xff] %vm24_vm1, %v435_v43  ;;  %v694_v51 = vmul.f32 0.015625, %v566_v49  ;;  %v683_v43 = vmul.f32 0.015625, %v555_v38  ;;  %v118_v49 = vld [vmem:[#allocation2 + $0xe8] sm:$0xff] }
  0xf4   :  { %v1465_v52 = vpack.i.bf16 %v726_v47, %v712_v48  ;;  %v136_v47 = vld [vmem:[#allocation2 + $0x178] sm:$0xff] }
  0xf5   :  { %v1460_v55 = vpack.i.bf16 %v694_v51, %v680_v50 }
  0xf6   :  { %v394_v57 = vpop.xlane.xlu2 %393  ;;  %v352_v58 = vpop.xlane.xlu1 %351 }
  0xf7   :  { %1466 = vperm.xlu2 %1373, %v1465_v52   ;;  %1461 = vperm.xlu0 %1379, %v1460_v55   ;;  %v468_v59 = vadd.f32 %v394_v57, %v147_v53  ;;  %v454_v60 = vadd.f32 %v352_v58, %v133_v54  ;;  %v298_v61 = vpop.xlane.xlu0 %297  ;;  %v556_v57 = vld [vmem:[#allocation2 + $0x70] sm:$0xff] }
  0xf8   :  { %v436_v62 = vadd.f32 %v298_v61, %v115_v56  ;;  %v599_v63 = vld [vmem:[#allocation2 + $0x1c8] sm:$0xff] }
  0xf9   :  { %533 = vst.msk [vmem:[#allocation2 + $0x1d0] sm:$0xff] %vm24_vm1, %v468_v59  ;;  %v585_v2 = vld [vmem:[#allocation2 + $0x158] sm:$0xff]  ;;  %v727_v3 = vmul.f32 0.015625, %v599_v63 }
  0xfa   :  { %519 = vst.msk [vmem:[#allocation2 + $0x160] sm:$0xff] %vm24_vm1, %v454_v60  ;;  %v713_v4 = vmul.f32 0.015625, %v585_v2  ;;  %v567_v5 = vld [vmem:[#allocation2 + $0xc8] sm:$0xff]  ;;  %v120_v2 = vld [vmem:[#allocation2 + $0xf8] sm:$0xff] }
  0xfb   :  { %501 = vst.msk [vmem:[#allocation2 + $0xd0] sm:$0xff] %vm24_vm1, %v436_v62  ;;  %v695_v7 = vmul.f32 0.015625, %v567_v5  ;;  %v684_v62 = vmul.f32 0.015625, %v556_v57  ;;  %v119_v5 = vld [vmem:[#allocation2 + $0xf0] sm:$0xff] }
  0xfc   :  { %v1475_v8 = vpack.i.bf16 %v727_v3, %v713_v4  ;;  %v151_v3 = vld [vmem:[#allocation2 + $0x1f0] sm:$0xff] }
  0xfd   :  { %v1470_v11 = vpack.i.bf16 %v695_v7, %v681_v6  ;;  %v748_v57 = vld [vmem:[%s2468_s1 + $0x70] sm:$0xff] }
  0xfe   :  { %v397_v13 = vpop.xlane.xlu2 %396  ;;  %v355_v14 = vpop.xlane.xlu1 %354 }
  0xff   :  { %1476 = vperm.xlu0 %1379, %v1475_v8   ;;  %1471 = vperm.xlu1 %1367, %v1470_v11   ;;  %v469_v15 = vadd.f32 %v397_v13, %v148_v9  ;;  %v455_v16 = vadd.f32 %v355_v14, %v134_v10  ;;  %v301_v17 = vpop.xlane.xlu0 %300  ;;  %v557_v13 = vld [vmem:[#allocation2 + $0x78] sm:$0xff] }
 0x100   :  { %v437_v1 = vadd.f32 %v301_v17, %v116_v12  ;;  %v600_v18 = vld [vmem:[#allocation2 + $0x1d0] sm:$0xff] }
 0x101   :  { %534 = vst.msk [vmem:[#allocation2 + $0x1d8] sm:$0xff] %vm24_vm1, %v469_v15  ;;  %v586_v20 = vld [vmem:[#allocation2 + $0x160] sm:$0xff]  ;;  %v728_v21 = vmul.f32 0.015625, %v600_v18 }
 0x102   :  { %520 = vst.msk [vmem:[#allocation2 + $0x168] sm:$0xff] %vm24_vm1, %v455_v16  ;;  %v714_v22 = vmul.f32 0.015625, %v586_v20  ;;  %v568_v23 = vld [vmem:[#allocation2 + $0xd0] sm:$0xff] }
 0x103   :  { %502 = vst.msk [vmem:[#allocation2 + $0xd8] sm:$0xff] %vm24_vm1, %v437_v1  ;;  %v696_v25 = vmul.f32 0.015625, %v568_v23  ;;  %v685_v1 = vmul.f32 0.015625, %v557_v13  ;;  %v762_v13 = vld [vmem:[%s2468_s1 + $0xe0] sm:$0xff] }
 0x104   :  { %v1485_v26 = vpack.i.bf16 %v728_v21, %v714_v22  ;;  %v152_v21 = vld [vmem:[#allocation2 + $0x1f8] sm:$0xff] }
 0x105   :  { %v1480_v29 = vpack.i.bf16 %v696_v25, %v682_v24 }
 0x106   :  { %v400_v31 = vpop.xlane.xlu2 %399  ;;  %v358_v32 = vpop.xlane.xlu1 %357 }
 0x107   :  { %1486 = vperm.xlu1 %1367, %v1485_v26   ;;  %1481 = vperm.xlu2 %1373, %v1480_v29   ;;  %v470_v33 = vadd.f32 %v400_v31, %v149_v27  ;;  %v456_v34 = vadd.f32 %v358_v32, %v135_v28  ;;  %v304_v35 = vpop.xlane.xlu0 %303 }
 0x108   :  { %v438_v36 = vadd.f32 %v304_v35, %v117_v30  ;;  %v601_v37 = vld [vmem:[#allocation2 + $0x1d8] sm:$0xff] }
 0x109   :  { %535 = vst.msk [vmem:[#allocation2 + $0x1e0] sm:$0xff] %vm24_vm1, %v470_v33  ;;  %v587_v39 = vld [vmem:[#allocation2 + $0x168] sm:$0xff]  ;;  %v729_v40 = vmul.f32 0.015625, %v601_v37 }
 0x10a   :  { %521 = vst.msk [vmem:[#allocation2 + $0x170] sm:$0xff] %vm24_vm1, %v456_v34  ;;  %v715_v41 = vmul.f32 0.015625, %v587_v39  ;;  %v569_v42 = vld [vmem:[#allocation2 + $0xd8] sm:$0xff] }
 0x10b   :  { %503 = vst.msk [vmem:[#allocation2 + $0xe0] sm:$0xff] %vm24_vm1, %v438_v36  ;;  %v697_v44 = vmul.f32 0.015625, %v569_v42  ;;  %v1026_v36 = vlaneseq }
 0x10c   :  { %v1495_v45 = vpack.i.bf16 %v729_v40, %v715_v41 }
 0x10d   :  { %v1490_v48 = vpack.i.bf16 %v697_v44, %v683_v43  ;;  %v2029_v38 = vand.u32 127, %v1026_v36 }
 0x10e   :  { %v403_v50 = vpop.xlane.xlu2 %402  ;;  %v361_v51 = vpop.xlane.xlu1 %360 }
 0x10f   :  { %1496 = vperm.xlu2 %1373, %v1495_v45   ;;  %1491 = vperm.xlu0 %1379, %v1490_v48   ;;  %v471_v52 = vadd.f32 %v403_v50, %v150_v46  ;;  %v457_v53 = vadd.f32 %v361_v51, %v136_v47  ;;  %v307_v54 = vpop.xlane.xlu0 %306  ;;  %v2035_v41 = vadd.s32 4294967288, %v2029_v38 }
 0x110   :  { %v439_v55 = vadd.f32 %v307_v54, %v118_v49  ;;  %v602_v56 = vld [vmem:[#allocation2 + $0x1e0] sm:$0xff] }
 0x111   :  { %536 = vst.msk [vmem:[#allocation2 + $0x1e8] sm:$0xff] %vm24_vm1, %v471_v52  ;;  %v588_v58 = vld [vmem:[#allocation2 + $0x170] sm:$0xff]  ;;  %v730_v59 = vmul.f32 0.015625, %v602_v56 }
 0x112   :  { %522 = vst.msk [vmem:[#allocation2 + $0x178] sm:$0xff] %vm24_vm1, %v457_v53  ;;  %v716_v60 = vmul.f32 0.015625, %v588_v58  ;;  %v570_v61 = vld [vmem:[#allocation2 + $0xe0] sm:$0xff]  ;;  %v749_v53 = vld [vmem:[%s2468_s1 + $0x78] sm:$0xff]  ;;  %v747_v58 = vld [vmem:[%s2468_s1 + $0x68] sm:$0xff] }
 0x113   :  { %504 = vst.msk [vmem:[#allocation2 + $0xe8] sm:$0xff] %vm24_vm1, %v439_v55  ;;  %v698_v63 = vmul.f32 0.015625, %v570_v61  ;;  %1187 = vmatpush.msra.mxu0 %v749_v53 }
 0x114   :  { %v1505_v0 = vpack.i.bf16 %v730_v59, %v716_v60  ;;  %v746_v59 = vld [vmem:[%s2468_s1 + $0x60] sm:$0xff]  ;;  %v745_v60 = vld [vmem:[%s2468_s1 + $0x58] sm:$0xff] }
 0x115   :  { %v1500_v4 = vpack.i.bf16 %v698_v63, %v684_v62  ;;  %1188 = vmatpush.msra.mxu0 %v748_v57  ;;  %v2172_v57 = vadd.s32 4294967240, %v2029_v38 }
 0x116   :  { %v313_v6 = vpop.xlane.xlu2 %312  ;;  %v406_v7 = vpop.xlane.xlu1 %405 }
 0x117   :  { %1506 = vperm.xlu0 %1379, %v1505_v0   ;;  %1501 = vperm.xlu1 %1367, %v1500_v4   ;;  %v441_v8 = vadd.f32 %v313_v6, %v120_v2  ;;  %v472_v9 = vadd.f32 %v406_v7, %v151_v3  ;;  %v310_v10 = vpop.xlane.xlu0 %309  ;;  %v765_v0 = vld [vmem:[%s2468_s1 + $0xf8] sm:$0xff]  ;;  %v744_v2 = vld [vmem:[%s2468_s1 + $0x50] sm:$0xff]  ;;  %v743_v6 = vld [vmem:[%s2468_s1 + $0x48] sm:$0xff] }
 0x118   :  { %v440_v11 = vadd.f32 %v310_v10, %v119_v5  ;;  %v603_v12 = vld [vmem:[#allocation2 + $0x1e8] sm:$0xff]  ;;  %1189 = vmatpush.msra.mxu0 %v747_v58  ;;  %v764_v3 = vld [vmem:[%s2468_s1 + $0xf0] sm:$0xff]  ;;  %1207 = vmatpush.msra.mxu1 %v765_v0  ;;  %v758_v58 = vld [vmem:[%s2468_s1 + $0xc0] sm:$0xff] }
 0x119   :  { %506 = vst.msk [vmem:[#allocation2 + $0xf8] sm:$0xff] %vm24_vm1, %v441_v8  ;;  %v589_v14 = vld [vmem:[#allocation2 + $0x178] sm:$0xff]  ;;  %v731_v15 = vmul.f32 0.015625, %v603_v12  ;;  %v763_v7 = vld [vmem:[%s2468_s1 + $0xe8] sm:$0xff]  ;;  %v742_v8 = vld [vmem:[%s2468_s1 + $0x40] sm:$0xff] }
 0x11a   :  { %537 = vst.msk [vmem:[#allocation2 + $0x1f0] sm:$0xff] %vm24_vm1, %v472_v9  ;;  %v717_v16 = vmul.f32 0.015625, %v589_v14  ;;  %v571_v17 = vld [vmem:[#allocation2 + $0xe8] sm:$0xff]  ;;  %1190 = vmatpush.msra.mxu0 %v746_v59  ;;  %1208 = vmatpush.msra.mxu1 %v764_v3  ;;  %v741_v14 = vld [vmem:[%s2468_s1 + $0x38] sm:$0xff] }
 0x11b   :  { %505 = vst.msk [vmem:[#allocation2 + $0xf0] sm:$0xff] %vm24_vm1, %v440_v11  ;;  %v699_v18 = vmul.f32 0.015625, %v571_v17  ;;  %v2115_v17 = vadd.s32 4294967280, %v2029_v38  ;;  %v737_v59 = vld [vmem:[%s2468_s1 + $0x18] sm:$0xff] }
 0x11c   :  { %v1515_v19 = vpack.i.bf16 %v731_v15, %v717_v16  ;;  %1191 = vmatpush.msra.mxu0 %v745_v60  ;;  %1209 = vmatpush.msra.mxu1 %v763_v7  ;;  %v757_v7 = vld [vmem:[%s2468_s1 + $0xb8] sm:$0xff] }
 0x11d   :  { %v1510_v20 = vpack.i.bf16 %v699_v18, %v685_v1  ;;  %v2119_v18 = vadd.s32 4294967272, %v2029_v38 }
 0x11e   :  { %v1376_v30 = vpop.permute.xlu2 %1375  ;;  %1192 = vmatpush.msra.mxu0 %v744_v2  ;;  %1210 = vmatpush.msra.mxu1 %v762_v13 }
 0x11f   :  { %1516 = vperm.xlu1 %1367, %v1515_v19   ;;  %1511 = vperm.xlu2 %1373, %v1510_v20   ;;  %v409_v22 = vpop.xlane.xlu0 %408  ;;  %v1378_v62 = vunpack.i.h.bf16 %v1376_v30  ;;  %v1377_v63 = vunpack.i.l.bf16 %v1376_v30 }
 0x120   :  { %v473_v23 = vadd.f32 %v409_v22, %v152_v21  ;;  %v573_v29 = vld [vmem:[#allocation2 + $0xf8] sm:$0xff]  ;;  %1193 = vmatpush.msra.mxu0 %v743_v6 }
 0x121   :  { %v604_v24 = vld [vmem:[#allocation2 + $0x1f0] sm:$0xff]  ;;  %v701_v31 = vmul.f32 0.015625, %v573_v29  ;;  %v1121_v9 = vperm.slane %v1378_v62, %v2035_v41  ;;  %v1120_v10 = vperm.slane %v1377_v63, %v2029_v38 }
 0x122   :  { %538 = vst.msk [vmem:[#allocation2 + $0x1f8] sm:$0xff] %vm24_vm1, %v473_v23  ;;  %v572_v25 = vld [vmem:[#allocation2 + $0xf0] sm:$0xff]  ;;  %v732_v26 = vmul.f32 0.015625, %v604_v24  ;;  %1194 = vmatpush.msra.mxu0 %v742_v8  ;;  %vm1182_vm1 = vcmask 1041409  }
 0x123   :  { %v700_v27 = vmul.f32 0.015625, %v572_v25  ;;  %v1122_v22 = vsel %vm1031_vm2, %v1121_v9, %v1120_v10  ;;  %v2128_v25 = vadd.s32 4294967264, %v2029_v38  ;;  %v736_v8 = vld [vmem:[%s2468_s1 + $0x10] sm:$0xff] }
 0x124   :  { %1195 = vmatpush.msra.mxu0 %v741_v14  ;;  %v2201_v14 = vadd.s32 4294967224, %v2029_v38 }
 0x125   :  { %v1520_v28 = vpack.i.bf16 %v732_v26, %v700_v27  ;;  %v761_v26 = vld [vmem:[%s2468_s1 + $0xd8] sm:$0xff]  ;;  %v740_v27 = vld [vmem:[%s2468_s1 + $0x30] sm:$0xff] }
 0x126   :  { %v2027_v37 = vpop.permute.xlu2 %1386  ;;  %1211 = vmatpush.msra.mxu1 %v761_v26  ;;  %1196 = vmatpush.msra.mxu0 %v740_v27  ;;  %v755_v26 = vld [vmem:[%s2468_s1 + $0xa8] sm:$0xff]  ;;  %v734_v27 = vld [vmem:[%s2468_s1] sm:$0xff] }
 0x127   :  { %1521 = vperm.xlu0 %1379, %v1520_v28   ;;  %v1389_v39 = vunpack.i.h.bf16 %v2027_v37  ;;  %v1388_v20 = vunpack.i.l.bf16 %v2027_v37  ;;  %v760_v28 = vld [vmem:[%s2468_s1 + $0xd0] sm:$0xff] }
 0x128   :  { %1212 = vmatpush.msra.mxu1 %v760_v28 }
 0x129   :  { %v605_v32 = vld [vmem:[#allocation2 + $0x1f8] sm:$0xff]  ;;  %v1089_v43 = vperm.slane %v1389_v39, %v2029_v38  ;;  %v2153_v39 = vadd.s32 4294967248, %v2029_v38 }
 0x12a   :  { %v733_v33 = vmul.f32 0.015625, %v605_v32 }
 0x12c   :  { %v1525_v34 = vpack.i.bf16 %v733_v33, %v701_v31 }
 0x12e   :  { %1526 = vperm.xlu2 %1373, %v1525_v34   ;;  %v2025_v35 = vpop.permute.xlu1 %1369  ;;  %v2043_v46 = vpop.permute.xlu2 %1396  ;;  %v739_v34 = vld [vmem:[%s2468_s1 + $0x28] sm:$0xff] }
 0x12f   :  { %v1372_v11 = vunpack.i.h.bf16 %v2025_v35  ;;  %v1371_v12 = vunpack.i.l.bf16 %v2025_v35  ;;  %v1399_v15 = vunpack.i.h.bf16 %v2043_v46  ;;  %v1398_v16 = vunpack.i.l.bf16 %v2043_v46  ;;  %1197 = vmatpush.msra.mxu0 %v739_v34 }
 0x131   :  { %v1030_v23 = vperm.slane %v1372_v11, %v2035_v41  ;;  %v1028_v24 = vperm.slane %v1371_v12, %v2029_v38  ;;  %v1152_v29 = vperm.slane %v1399_v15, %v2035_v41  ;;  %v1151_v30 = vperm.slane %v1398_v16, %v2029_v38  ;;  %v756_v16 = vld [vmem:[%s2468_s1 + $0xb0] sm:$0xff] }
 0x132   :  { %v2049_v49 = vpop.permute.xlu0 %1381  ;;  %v2204_v15 = vadd.s32 4294967232, %v2029_v38 }
 0x133   :  { %v1384_v1 = vunpack.i.h.bf16 %v2049_v49  ;;  %v1383_v19 = vunpack.i.l.bf16 %v2049_v49  ;;  %v1153_v60 = vsel %vm1031_vm2, %v1152_v29, %v1151_v30 }
 0x135   :  { %v1123_v31 = vperm.slane %v1384_v1, %v2115_v17  ;;  %v1034_v35 = vperm.slane %v1383_v19, %v2115_v17  ;;  %v2216_v19 = vadd.s32 4294967216, %v2029_v38 }
 0x136   :  { %v2032_v40 = vpop.permute.xlu1 %1391  ;;  %v2047_v48 = vpop.permute.xlu2 %1406 }
 0x137   :  { %v1393_v42 = vunpack.i.l.bf16 %v2032_v40  ;;  %v1394_v21 = vunpack.i.h.bf16 %v2032_v40  ;;  %v1409_v36 = vunpack.i.h.bf16 %v2047_v48  ;;  %v1408_v37 = vunpack.i.l.bf16 %v2047_v48  ;;  %v759_v40 = vld [vmem:[%s2468_s1 + $0xc8] sm:$0xff] }
 0x138   :  { %v1032_v48 = vsel %vm1031_vm2, %v1030_v23, %v1028_v24  ;;  %v1124_v62 = vsel %vm1035_vm3, %v1123_v31, %v1122_v22  ;;  %1213 = vmatpush.msra.mxu1 %v759_v40  ;;  %v754_v40 = vld [vmem:[%s2468_s1 + $0xa0] sm:$0xff] }
 0x139   :  { %v1090_v44 = vperm.slane %v1393_v42, %v2035_v41  ;;  %v738_v41 = vld [vmem:[%s2468_s1 + $0x20] sm:$0xff]  ;;  %v1038_v42 = vperm.slane %v1388_v20, %v2119_v18  ;;  %v1154_v2 = vperm.slane %v1409_v36, %v2115_v17  ;;  %v1127_v3 = vperm.slane %v1408_v37, %v2128_v25 }
 0x13a   :  { %1198 = vmatpush.msra.mxu0 %v738_v41  ;;  %1214 = vmatpush.msra.mxu1 %v758_v58  ;;  %v753_v58 = vld [vmem:[%s2468_s1 + $0x98] sm:$0xff] }
 0x13b   :  { %v2041_v45 = vsel %vm1031_vm2, %v1090_v44, %v1089_v43  ;;  %v1125_v43 = vperm.slane %v1394_v21, %v2119_v18  ;;  %v2164_v44 = vadd.s32 4294967256, %v2029_v38  ;;  %v1155_v21 = vsel %vm1035_vm3, %v1154_v2, %v1153_v60 }
 0x13c   :  { %1199 = vmatpush.msra.mxu0 %v737_v59  ;;  %1215 = vmatpush.msra.mxu1 %v757_v7 }
 0x13e   :  { %v2045_v47 = vpop.permute.xlu1 %1401  ;;  %v2053_v51 = vpop.permute.xlu2 %1421  ;;  %1200 = vmatpush.msra.mxu0 %v736_v8  ;;  %1216 = vmatpush.msra.mxu1 %v756_v16 }
 0x13f   :  { %v1404_v49 = vunpack.i.h.bf16 %v2045_v47  ;;  %v1403_v53 = vunpack.i.l.bf16 %v2045_v47  ;;  %v1036_v47 = vsel %vm1035_vm3, %v1034_v35, %v1032_v48  ;;  %v1424_v9 = vunpack.i.h.bf16 %v2053_v51 }
 0x140   :  { %v2055_v52 = vpop.permute.xlu0 %1416  ;;  %v1423_v10 = vunpack.i.l.bf16 %v2053_v51  ;;  %v1040_v51 = vsel %vm1039_vm4, %v1038_v42, %v1036_v47  ;;  %v2247_v42 = vadd.s32 4294967200, %v2029_v38  ;;  %1217 = vmatpush.msra.mxu1 %v755_v26 }
 0x141   :  { %v1419_v63 = vunpack.i.h.bf16 %v2055_v52  ;;  %v1418_v0 = vunpack.i.l.bf16 %v2055_v52  ;;  %v1126_v52 = vsel %vm1039_vm4, %v1125_v43, %v1124_v62  ;;  %v1092_v12 = vperm.slane %v1404_v49, %v2115_v17 }
 0x142   :  { %v1042_v13 = vperm.slane %v1403_v53, %v2128_v25  ;;  %v1128_v22 = vsel %vm1043_vm5, %v1127_v3, %v1126_v52  ;;  %v1096_v28 = vperm.slane %v1424_v9, %v2128_v25  ;;  %v1050_v29 = vperm.slane %v1423_v10, %v2153_v39  ;;  %1218 = vmatpush.msra.mxu1 %v754_v40  ;;  %v752_v3 = vld [vmem:[%s2468_s1 + $0x90] sm:$0xff] }
 0x143   :  { %v1156_v17 = vperm.slane %v1419_v63, %v2119_v18  ;;  %v1129_v1 = vperm.slane %v1418_v0, %v2164_v44  ;;  %v1093_v35 = vsel %vm1035_vm3, %v1092_v12, %v2041_v45  ;;  %v2252_v45 = vadd.s32 4294967208, %v2029_v38 }
 0x144   :  { %v1044_v34 = vsel %vm1043_vm5, %v1042_v13, %v1040_v51  ;;  %v2265_v63 = vadd.s32 4294967192, %v2029_v38  ;;  %1219 = vmatpush.msra.mxu1 %v753_v58 }
 0x145   :  { %v1130_v41 = vsel %vm1047_vm6, %v1129_v1, %v1128_v22  ;;  %v750_v1 = vld [vmem:[%s2468_s1 + $0x80] sm:$0xff] }
 0x146   :  { %v2051_v50 = vpop.permute.xlu1 %1411  ;;  %v2062_v55 = vpop.permute.xlu2 %1436  ;;  %1220 = vmatpush.msra.mxu1 %v752_v3 }
 0x147   :  { %v1414_v6 = vunpack.i.h.bf16 %v2051_v50  ;;  %v1413_v11 = vunpack.i.l.bf16 %v2051_v50  ;;  %v735_v50 = vld [vmem:[%s2468_s1 + $0x8] sm:$0xff]  ;;  %v1439_v36 = vunpack.i.h.bf16 %v2062_v55  ;;  %v1438_v37 = vunpack.i.l.bf16 %v2062_v55 }
 0x148   :  { %1201 = vmatpush.msra.mxu0 %v735_v50 }
 0x149   :  { %v1094_v23 = vperm.slane %v1414_v6, %v2119_v18  ;;  %v1046_v30 = vperm.slane %v1413_v11, %v2164_v44  ;;  %v1160_v0 = vperm.slane %v1439_v36, %v2164_v44  ;;  %v1133_v47 = vperm.slane %v1438_v37, %v2172_v57  ;;  %v751_v11 = vld [vmem:[%s2468_s1 + $0x88] sm:$0xff] }
 0x14a   :  { %1202 = vmatpush.msra.mxu0 %v734_v27  ;;  %1221 = vmatpush.msra.mxu1 %v751_v11 }
 0x14b   :  { %v1095_v55 = vsel %vm1039_vm4, %v1094_v23, %v1093_v35  ;;  %v1048_v59 = vsel %vm1047_vm6, %v1046_v30, %v1044_v34 }
 0x14c   :  { %v1097_v6 = vsel %vm1043_vm5, %v1096_v28, %v1095_v55  ;;  %v1052_v10 = vsel %vm1051_vm7, %v1050_v29, %v1048_v59  ;;  %1222 = vmatpush.msra.mxu1 %v750_v1  ;;  %v2323_v55 = vadd.s32 4294967176, %v2029_v38 }
 0x14e   :  { %v2060_v54 = vpop.permute.xlu1 %1426  ;;  %v2089_v4 = vpop.permute.xlu2 %1451 }
 0x14f   :  { %v1428_v24 = vunpack.i.l.bf16 %v2060_v54  ;;  %v1429_v31 = vunpack.i.h.bf16 %v2060_v54  ;;  %v1157_v54 = vsel %vm1039_vm4, %v1156_v17, %v1155_v21 }
 0x151   :  { %v2064_v56 = vpop.permute.xlu0 %1431  ;;  %v1131_v48 = vperm.slane %v1428_v24, %v2153_v39  ;;  %v1158_v60 = vperm.slane %v1429_v31, %v2128_v25  ;;  %v1453_v25 = vunpack.i.l.bf16 %v2089_v4 }
 0x152   :  { %v1434_v49 = vunpack.i.h.bf16 %v2064_v56  ;;  %v1433_v53 = vunpack.i.l.bf16 %v2064_v56  ;;  %v1454_v56 = vunpack.i.h.bf16 %v2089_v4 }
 0x153   :  { %v1132_v52 = vsel %vm1051_vm7, %v1131_v48, %v1130_v41  ;;  %v1159_v4 = vsel %vm1043_vm5, %v1158_v60, %v1157_v54  ;;  %v1062_v21 = vperm.slane %v1453_v25, %v2201_v14 }
 0x154   :  { %v1098_v9 = vperm.slane %v1434_v49, %v2164_v44  ;;  %v1102_v44 = vperm.slane %v1454_v56, %v2172_v57  ;;  %v1134_v23 = vsel %vm1055_vm8, %v1133_v47, %v1132_v52  ;;  %v1161_v27 = vsel %vm1047_vm6, %v1160_v0, %v1159_v4 }
 0x156   :  { %v2166_v46 = vpop.permute.xlu2 %1466  ;;  %v1099_v26 = vsel %vm1047_vm6, %v1098_v9, %v1097_v6  ;;  %v2340_v6 = vadd.s32 4294967184, %v2029_v38 }
 0x157   :  { %v1469_v12 = vunpack.i.h.bf16 %v2166_v46  ;;  %v1468_v51 = vunpack.i.l.bf16 %v2166_v46 }
 0x159   :  { %v2091_v5 = vpop.permute.xlu0 %1446  ;;  %v2308_v29 = vperm.slane %v1469_v12, %v2204_v15  ;;  %v1139_v35 = vperm.slane %v1468_v51, %v2216_v19 }
 0x15a   :  { %v2078_v61 = vpop.permute.xlu1 %1441  ;;  %v1449_v7 = vunpack.i.h.bf16 %v2091_v5  ;;  %v1448_v8 = vunpack.i.l.bf16 %v2091_v5 }
 0x15b   :  { %v1443_v62 = vunpack.i.l.bf16 %v2078_v61  ;;  %v1444_v2 = vunpack.i.h.bf16 %v2078_v61  ;;  %v1054_v61 = vperm.slane %v1433_v53, %v2172_v57 }
 0x15c   :  { %v1162_v22 = vperm.slane %v1449_v7, %v2153_v39  ;;  %v1135_v24 = vperm.slane %v1448_v8, %v2204_v15 }
 0x15d   :  { %v1058_v13 = vperm.slane %v1443_v62, %v2204_v15  ;;  %v1100_v17 = vperm.slane %v1444_v2, %v2153_v39  ;;  %v1056_v46 = vsel %vm1055_vm8, %v1054_v61, %v1052_v10 }
 0x15e   :  { %v1136_v40 = vsel %vm1059_vm9, %v1135_v24, %v1134_v23  ;;  %v1163_v54 = vsel %vm1051_vm7, %v1162_v22, %v1161_v27 }
 0x15f   :  { %v1060_v30 = vsel %vm1059_vm9, %v1058_v13, %v1056_v46  ;;  %v1101_v36 = vsel %vm1051_vm7, %v1100_v17, %v1099_v26  ;;  %vm1326_vm7 = vcmp.ge.s32.totalorder %v2029_v38, 16 }
 0x160   :  { %v1064_v53 = vsel %vm1063_vm10, %v1062_v21, %v1060_v30  ;;  %v1103_v62 = vsel %vm1055_vm8, %v1102_v44, %v1101_v36 }
 0x161   :  { %v2249_v43 = vpop.permute.xlu2 %1481 }
 0x162   :  { %v2142_v32 = vpop.permute.xlu1 %1456  ;;  %v1484_v37 = vunpack.i.h.bf16 %v2249_v43  ;;  %v1483_v49 = vunpack.i.l.bf16 %v2249_v43 }
 0x163   :  { %v1458_v5 = vunpack.i.l.bf16 %v2142_v32  ;;  %v1459_v28 = vunpack.i.h.bf16 %v2142_v32 }
 0x164   :  { %v1108_v47 = vperm.slane %v1484_v37, %v2216_v19  ;;  %v1074_v52 = vperm.slane %v1483_v49, %v2247_v42 }
 0x165   :  { %v1137_v39 = vperm.slane %v1458_v5, %v2201_v14  ;;  %v1164_v48 = vperm.slane %v1459_v28, %v2172_v57 }
 0x167   :  { %v1138_v59 = vsel %vm1063_vm10, %v1137_v39, %v1136_v40  ;;  %v1165_v8 = vsel %vm1055_vm8, %v1164_v48, %v1163_v54  ;;  %vm1327_vm8 = vcmp.lt.s32.totalorder %v2029_v38, 20 }
 0x168   :  { %v1140_v9 = vsel %vm1067_vm11, %v1139_v35, %v1138_v59 }
 0x169   :  { %v2144_v33 = vpop.permute.xlu0 %1461  ;;  %v2312_v31 = vpop.permute.xlu2 %1496 }
 0x16a   :  { %v1463_v34 = vunpack.i.l.bf16 %v2144_v33  ;;  %v1464_v41 = vunpack.i.h.bf16 %v2144_v33  ;;  %v1498_v56 = vunpack.i.l.bf16 %v2312_v31  ;;  %v1499_v61 = vunpack.i.h.bf16 %v2312_v31 }
 0x16c   :  { %v1066_v60 = vperm.slane %v1463_v34, %v2216_v19  ;;  %v1104_v3 = vperm.slane %v1464_v41, %v2204_v15  ;;  %v1145_v12 = vperm.slane %v1498_v56, %v2265_v63 }
 0x16e   :  { %v1068_v11 = vsel %vm1067_vm11, %v1066_v60, %v1064_v53  ;;  %v1105_v51 = vsel %vm1059_vm9, %v1104_v3, %v1103_v62  ;;  %v1172_v62 = vperm.slane %v1499_v61, %v2252_v45 }
 0x171   :  { %v2218_v20 = vpop.permute.xlu1 %1471  ;;  %v2234_v18 = vpop.permute.xlu0 %1476 }
 0x172   :  { %v1473_v32 = vunpack.i.l.bf16 %v2218_v20  ;;  %v1478_v58 = vunpack.i.l.bf16 %v2234_v18  ;;  %v1474_v25 = vunpack.i.h.bf16 %v2218_v20  ;;  %v1479_v5 = vunpack.i.h.bf16 %v2234_v18 }
 0x174   :  { %v1070_v57 = vperm.slane %v1473_v32, %v2252_v45  ;;  %v1141_v10 = vperm.slane %v1478_v58, %v2252_v45  ;;  %v1106_v17 = vperm.slane %v1474_v25, %v2201_v14  ;;  %v1168_v28 = vperm.slane %v1479_v5, %v2201_v14  ;;  %v1280_v5 = vld [vmem:[%s2470_s3 + $0x68] sm:$0xff] }
 0x176   :  { %v1072_v13 = vsel %vm1071_vm12, %v1070_v57, %v1068_v11  ;;  %v1142_v22 = vsel %vm1071_vm12, %v1141_v10, %v1140_v9  ;;  %v1107_v32 = vsel %vm1063_vm10, %v1106_v17, %v1105_v51  ;;  %v1278_v51 = vld [vmem:[%s2470_s3 + $0x58] sm:$0xff]  ;;  %v1530_v17 = vld [vmem:[%s2467_s2] ss:$0 sm:$0xff] }
 0x177   :  { %v1076_v27 = vsel %vm1075_vm13, %v1074_v52, %v1072_v13 }
 0x179   :  { %v2289_v16 = vpop.permute.xlu1 %1486  ;;  %v1512_v4 = vpop.permute.xlu2 %1511 }
 0x17a   :  { %v1488_v0 = vunpack.i.l.bf16 %v2289_v16  ;;  %v1489_v1 = vunpack.i.h.bf16 %v2289_v16  ;;  %v1513_v23 = vunpack.i.l.bf16 %v1512_v4  ;;  %v1514_v59 = vunpack.i.h.bf16 %v1512_v4 }
 0x17c   :  { %v1143_v15 = vperm.slane %v1488_v0, %v2247_v42  ;;  %v1170_v31 = vperm.slane %v1489_v1, %v2216_v19  ;;  %v1086_v35 = vperm.slane %v1513_v23, %v2323_v55  ;;  %v1167_v19 = vsel %vm1059_vm9, %v2308_v29, %v1165_v8  ;;  %vm1328_vm9 = vmand %vm1326_vm7, %vm1327_vm8 }
 0x17d   :  { %v1169_v58 = vsel %vm1063_vm10, %v1168_v28, %v1167_v19  ;;  %v1273_v28 = vld [vmem:[%s2470_s3 + $0x30] sm:$0xff]  ;;  %vm1330_vm10 = vcmask 1041408  }
 0x17e   :  { %v1144_v24 = vsel %vm1075_vm13, %v1143_v15, %v1142_v22  ;;  %v1171_v0 = vsel %vm1067_vm11, %v1170_v31, %v1169_v58  ;;  %v1276_v22 = vld [vmem:[%s2470_s3 + $0x48] sm:$0xff]  ;;  %v1271_v31 = vld [vmem:[%s2470_s3 + $0x20] sm:$0xff] }
 0x17f   :  { %v1146_v37 = vsel %vm1079_vm14, %v1145_v12, %v1144_v24  ;;  %v1173_v52 = vsel %vm1071_vm12, %v1172_v62, %v1171_v0 }
 0x181   :  { %v2291_v50 = vpop.permute.xlu0 %1491 }
 0x182   :  { %v1493_v43 = vunpack.i.l.bf16 %v2291_v50  ;;  %v1494_v26 = vunpack.i.h.bf16 %v2291_v50 }
 0x184   :  { %v1078_v44 = vperm.slane %v1493_v43, %v2265_v63  ;;  %v1110_v14 = vperm.slane %v1494_v26, %v2252_v45  ;;  %v1114_v45 = vperm.slane %v1514_v59, %v2265_v63  ;;  %v1275_v26 = vld [vmem:[%s2470_s3 + $0x40] sm:$0xff] }
 0x186   :  { %v1080_v39 = vsel %vm1079_vm14, %v1078_v44, %v1076_v27  ;;  %v1279_v44 = vld [vmem:[%s2470_s3 + $0x60] sm:$0xff] }
 0x188   :  { %v1527_v48 = vpop.permute.xlu2 %1526 }
 0x189   :  { %v1502_v33 = vpop.permute.xlu1 %1501  ;;  %v1507_v2 = vpop.permute.xlu0 %1506  ;;  %v1529_v57 = vunpack.i.h.bf16 %v1527_v48  ;;  %v1528_v43 = vunpack.i.l.bf16 %v1527_v48 }
 0x18a   :  { %v1503_v7 = vunpack.i.l.bf16 %v1502_v33  ;;  %v1508_v20 = vunpack.i.l.bf16 %v1507_v2  ;;  %v1504_v30 = vunpack.i.h.bf16 %v1502_v33  ;;  %v1509_v50 = vunpack.i.h.bf16 %v1507_v2 }
 0x18b   :  { %v1109_v33 = vsel %vm1067_vm11, %v1108_v47, %v1107_v32  ;;  %v1180_v10 = vperm.slane %v1529_v57, %v2323_v55  ;;  %v1118_v61 = vperm.slane %v1528_v43, %v2323_v55 }
 0x18c   :  { %v1082_v21 = vperm.slane %v1503_v7, %v2340_v6  ;;  %v1147_v18 = vperm.slane %v1508_v20, %v2340_v6  ;;  %v1112_v41 = vperm.slane %v1504_v30, %v2247_v42  ;;  %v1174_v29 = vperm.slane %v1509_v50, %v2247_v42  ;;  %v1269_v50 = vld [vmem:[%s2470_s3 + $0x10] sm:$0xff] }
 0x18d   :  { %v1111_v56 = vsel %vm1071_vm12, %v1110_v14, %v1109_v33 }
 0x18e   :  { %v1084_v34 = vsel %vm1083_vm15, %v1082_v21, %v1080_v39  ;;  %v1148_v54 = vsel %vm1083_vm15, %v1147_v18, %v1146_v37  ;;  %v1113_v25 = vsel %vm1075_vm13, %v1112_v41, %v1111_v56  ;;  %v1175_v47 = vsel %vm1075_vm13, %v1174_v29, %v1173_v52  ;;  %v1277_v21 = vld [vmem:[%s2470_s3 + $0x50] sm:$0xff]  ;;  %v1267_v37 = vld [vmem:[%s2470_s3] sm:$0xff] }
 0x18f   :  { %v1088_v49 = vsel %vm1087_vm0, %v1086_v35, %v1084_v34  ;;  %v1115_v11 = vsel %vm1079_vm14, %v1114_v45, %v1113_v25  ;;  %v1270_v35 = vld [vmem:[%s2470_s3 + $0x18] sm:$0xff]  ;;  %v1546_v52 = vmov 1.0  }
 0x191   :  { %v1517_v46 = vpop.permute.xlu1 %1516 }
 0x192   :  { %v1518_v16 = vunpack.i.l.bf16 %v1517_v46  ;;  %v1519_v40 = vunpack.i.h.bf16 %v1517_v46  ;;  %v1274_v46 = vld [vmem:[%s2470_s3 + $0x38] sm:$0xff] }
 0x194   :  { %v1149_v36 = vperm.slane %v1518_v16, %v2323_v55  ;;  %v1176_v2 = vperm.slane %v1519_v40, %v2265_v63  ;;  %v1281_v55 = vld [vmem:[%s2470_s3 + $0x70] sm:$0xff]  ;;  %v1272_v16 = vld [vmem:[%s2470_s3 + $0x28] sm:$0xff] }
 0x196   :  { %v1150_v53 = vsel %vm1087_vm0, %v1149_v36, %v1148_v54  ;;  %v1177_v15 = vsel %vm1079_vm14, %v1176_v2, %v1175_v47  ;;  %v1268_v36 = vld [vmem:[%s2470_s3 + $0x8] sm:$0xff] }
 0x197   :  { %v1183_v60 = vsel %vm1182_vm1, %v1150_v53, %v1088_v49 }
 0x198   :  { %1203 = vmatmul.f32.vlgmr.msra.gmra.mxu0 %v1183_v60 }
 0x199   :  { %v1522_v3 = vpop.permute.xlu0 %1521 }
 0x19a   :  { %v1524_v7 = vunpack.i.h.bf16 %v1522_v3  ;;  %v1523_v8 = vunpack.i.l.bf16 %v1522_v3 }
 0x19c   :  { %v1178_v42 = vperm.slane %v1524_v7, %v2340_v6  ;;  %v1116_v9 = vperm.slane %v1523_v8, %v2340_v6  ;;  %v1282_v6 = vld [vmem:[%s2470_s3 + $0x78] sm:$0xff] }
 0x19d   :  { %1287 = vmatpush.msra.mxu2 %v1282_v6 }
 0x19e   :  { %v1117_v4 = vsel %vm1083_vm15, %v1116_v9, %v1115_v11  ;;  %v1179_v63 = vsel %vm1083_vm15, %v1178_v42, %v1177_v15  ;;  %v1531_v11 = vld [vmem:[%s2469_s4] ss:$0 sm:$0xff] }
 0x19f   :  { %v1119_v20 = vsel %vm1087_vm0, %v1118_v61, %v1117_v4  ;;  %v1181_v12 = vsel %vm1087_vm0, %v1180_v10, %v1179_v63  ;;  %1288 = vmatpush.msra.mxu2 %v1281_v55 }
 0x1a0   :  { %v1184_v13 = vsel %vm1182_vm1, %v1181_v12, %v1119_v20 }
 0x1a1   :  { %1223 = vmatmul.f32.vlgmr.msra.gmra.mxu1 %v1184_v13  ;;  %1289 = vmatpush.msra.mxu2 %v1280_v5 }
 0x1a3   :  { %1290 = vmatpush.msra.mxu2 %v1279_v44 }
 0x1a5   :  { %1291 = vmatpush.msra.mxu2 %v1278_v51 }
 0x1a7   :  { %1292 = vmatpush.msra.mxu2 %v1277_v21 }
 0x1a9   :  { %1293 = vmatpush.msra.mxu2 %v1276_v22 }
 0x1ab   :  { %1294 = vmatpush.msra.mxu2 %v1275_v26 }
 0x1ad   :  { %1295 = vmatpush.msra.mxu2 %v1274_v46 }
 0x1af   :  { %1296 = vmatpush.msra.mxu2 %v1273_v28 }
 0x1b1   :  { %1297 = vmatpush.msra.mxu2 %v1272_v16 }
 0x1b3   :  { %1298 = vmatpush.msra.mxu2 %v1271_v31 }
 0x1b5   :  { %1299 = vmatpush.msra.mxu2 %v1270_v35 }
 0x1b7   :  { %1300 = vmatpush.msra.mxu2 %v1269_v50 }
 0x1b9   :  { %1301 = vmatpush.msra.mxu2 %v1268_v36 }
 0x1bb   :  { %1302 = vmatpush.msra.mxu2 %v1267_v37 }
 0x215   :  { %v1204_v1 = vpop.f32.mrf.mxu0 }
 0x216   :  { %v1205_v23 = vadd.f32 %v1530_v17, %v1204_v1 }
 0x21e   :  { %v1224_v24 = vpop.f32.mrf.mxu1 }
 0x21f   :  { %v1225_v18 = vadd.f32 %v1224_v24, %v1205_v23 }
 0x221   :  { %v1228_v27 = vmul.f32 0.70710677, %v1225_v18  ;;  %v1227_v9 = vmul.f32 0.5, %v1225_v18 }
 0x223   :  { %v1231_v30 = vand.u32 2147483647, %v1228_v27  ;;  %vm1229_vm6 = vcmp.lt.f32.partialorder %v1228_v27, 0.0 }
 0x224   :  { %v1230_v47 = vsel %vm1229_vm6, -1.0, %v1546_v52 }
 0x225   :  { %v1232_v39 = vmul.f32 0.3275911, %v1231_v30  ;;  %v1258_v58 = vsub.f32 0.0, %v1231_v30 }
 0x227   :  { %v1233_v34 = vadd.f32 1.0, %v1232_v39  ;;  %v1259_v0 = vmul.f32 %v1258_v58, %v1231_v30 }
 0x229   :  { %1532 = vrcp.f32 %v1233_v34  ;;  %v1245_v54 = vand.u32 2147483648, %v1233_v34  ;;  %v1243_v41 = vand.u32 2147483647, %v1233_v34  ;;  %vm1239_vm3 = vweird.f32 %v1233_v34 }
 0x22a   :  { %v1260_v56 = vmul.f32 1.442695, %v1259_v0 }
 0x22b   :  { %v1246_v49 = vor.u32 1.1754944e-38, %v1245_v54  ;;  %vm1244_vm5 = vcmp.eq.f32.partialorder %v1243_v41, 8.507059e+37 }
 0x22c   :  { %1534 = vpow2.f32 %v1260_v56 }
 0x22f   :  { %v1533_v32 = vpop.eup %1532 }
 0x230   :  { %v1235_v14 = vmul.f32 %v1533_v32, %v1233_v34  ;;  %vm1240_vm2 = vweird.f32 %v1533_v32 }
 0x231   :  { %vm1241_vm4 = vmor %vm1239_vm3, %vm1240_vm2  ;;  %vm1356_vm2 = vcmp.lt.s32.totalorder %v2029_v38, 16 }
 0x232   :  { %v1236_v40 = vsub.f32 1.0, %v1235_v14  ;;  %v1535_v7 = vpop.eup %1534 }
 0x234   :  { %v1237_v19 = vmul.f32 %v1533_v32, %v1236_v40 }
 0x236   :  { %v1238_v48 = vadd.f32 %v1533_v32, %v1237_v19 }
 0x238   :  { %v1242_v53 = vsel %vm1241_vm4, %v1533_v32, %v1238_v48 }
 0x239   :  { %v1247_v59 = vsel %vm1244_vm5, %v1246_v49, %v1242_v53 }
 0x23a   :  { %v1249_v60 = vmul.f32 1.0614054, %v1247_v59 }
 0x23c   :  { %v1250_v62 = vadd.f32 -1.4531521, %v1249_v60 }
 0x23e   :  { %v1251_v33 = vmul.f32 %v1250_v62, %v1247_v59 }
 0x240   :  { %v1252_v29 = vadd.f32 1.4214138, %v1251_v33 }
 0x242   :  { %v1253_v57 = vmul.f32 %v1252_v29, %v1247_v59 }
 0x244   :  { %v1254_v43 = vadd.f32 -0.28449672, %v1253_v57 }
 0x246   :  { %v1255_v2 = vmul.f32 %v1254_v43, %v1247_v59 }
 0x248   :  { %v1256_v3 = vadd.f32 0.2548296, %v1255_v2 }
 0x24a   :  { %v1257_v25 = vmul.f32 %v1256_v3, %v1247_v59 }
 0x24c   :  { %v1262_v8 = vmul.f32 %v1535_v7, %v1257_v25 }
 0x24e   :  { %v1263_v45 = vsub.f32 1.0, %v1262_v8 }
 0x250   :  { %v1264_v42 = vmul.f32 %v1263_v45, %v1230_v47 }
 0x252   :  { %v1265_v10 = vadd.f32 1.0, %v1264_v42 }
 0x254   :  { %v1266_v61 = vmul.f32 %v1265_v10, %v1227_v9 }
 0x256   :  { %1303 = vmatmul.f32.vlgmr.msra.gmra.mxu2 %v1266_v61 }
 0x2d9   :  { %v1304_v15 = vpop.f32.mrf.mxu2 }
 0x2da   :  { %v1305_v4 = vadd.f32 %v1531_v11, %v1304_v15 }
 0x2dc   :  { %v1329_v63 = vsel %vm1328_vm9, %v1305_v4, -1e+30  ;;  %v1363_v51 = vmul.f32 -1.442695, %v1305_v4 }
 0x2dd   :  { %v1331_v20 = vsel %vm1330_vm10, %v1329_v63, -inf }
 0x2de   :  { %1332 = vmax.xlane.f32.xlu1 %v1331_v20 }
 0x351   :  { %v1333_v12 = vpop.xlane.xlu1 %1332 }
 0x352   :  { %v1334_v13 = vsub.f32 %v1329_v63, %v1333_v12 }
 0x354   :  { %v1335_v6 = vmul.f32 1.442695, %v1334_v13 }
 0x356   :  { %1536 = vpow2.f32 %v1335_v6 }
 0x357   :  { %1538 = vpow2.f32 %v1363_v51 }
 0x35c   :  { %v1537_v55 = vpop.eup %1536 }
 0x35d   :  { %v1337_v5 = vsel %vm1328_vm9, %v1537_v55, 0.0  ;;  %v1539_v17 = vpop.eup %1538 }
 0x35e   :  { %v1338_v44 = vsel %vm1330_vm10, %v1337_v5, 0.0  ;;  %v1310_v1 = vadd.f32 1.0, %v1539_v17 }
 0x35f   :  { %1339 = vadd.xlane.f32.xlu0 %v1338_v44 }
 0x360   :  { %1540 = vrcp.f32 %v1310_v1  ;;  %vm1316_vm13 = vweird.f32 %v1310_v1  ;;  %v1322_v31 = vand.u32 2147483648, %v1310_v1  ;;  %v1320_v35 = vand.u32 2147483647, %v1310_v1 }
 0x362   :  { %v1323_v14 = vor.u32 1.1754944e-38, %v1322_v31  ;;  %vm1321_vm3 = vcmp.eq.f32.partialorder %v1320_v35, 8.507059e+37 }
 0x366   :  { %v1541_v21 = vpop.eup %1540 }
 0x367   :  { %v1312_v22 = vmul.f32 %v1541_v21, %v1310_v1  ;;  %vm1317_vm11 = vweird.f32 %v1541_v21 }
 0x368   :  { %vm2456_vm14 = vmor %vm1316_vm13, %vm1317_vm11 }
 0x369   :  { %v1313_v24 = vsub.f32 1.0, %v1312_v22 }
 0x36b   :  { %v1314_v18 = vmul.f32 %v1541_v21, %v1313_v24 }
 0x36d   :  { %v1315_v30 = vadd.f32 %v1541_v21, %v1314_v18 }
 0x36f   :  { %v1319_v37 = vsel %vm2456_vm14, %v1541_v21, %v1315_v30 }
 0x370   :  { %v1324_v19 = vsel %vm1321_vm3, %v1323_v14, %v1319_v37 }
 0x3d2   :  { %v1340_v23 = vpop.xlane.xlu0 %1339 }
 0x3d3   :  { %1542 = vrcp.f32 %v1340_v23  ;;  %v1352_v28 = vand.u32 2147483648, %v1340_v23  ;;  %v1350_v39 = vand.u32 2147483647, %v1340_v23  ;;  %vm1346_vm15 = vweird.f32 %v1340_v23 }
 0x3d5   :  { %v1353_v36 = vor.u32 1.1754944e-38, %v1352_v28  ;;  %vm1351_vm1 = vcmp.eq.f32.partialorder %v1350_v39, 8.507059e+37 }
 0x3d9   :  { %v1543_v26 = vpop.eup %1542 }
 0x3da   :  { %v1342_v46 = vmul.f32 %v1543_v26, %v1340_v23  ;;  %vm1347_vm12 = vweird.f32 %v1543_v26 }
 0x3db   :  { %vm1348_vm0 = vmor %vm1346_vm15, %vm1347_vm12 }
 0x3dc   :  { %v1343_v27 = vsub.f32 1.0, %v1342_v46 }
 0x3de   :  { %v1344_v16 = vmul.f32 %v1543_v26, %v1343_v27 }
 0x3e0   :  { %v1345_v50 = vadd.f32 %v1543_v26, %v1344_v16 }
 0x3e2   :  { %v1349_v32 = vsel %vm1348_vm0, %v1543_v26, %v1345_v50 }
 0x3e3   :  { %v1354_v40 = vsel %vm1351_vm1, %v1353_v36, %v1349_v32 }
 0x3e4   :  { %v1355_v54 = vmul.f32 %v1354_v40, %v1337_v5 }
 0x3e6   :  { %v1357_v41 = vsel %vm1356_vm2, %v1324_v19, %v1355_v54 }
 0x3e7   :  { %1358 = vst [vmem:[%s2471_s5] sm:$0x3] %v1357_v41 }

</bundles_post_ra>
